<compile_context>
chip_gen: v6e
topology: v6e:2x2x1
jax: 0.10.0
libtpu: 0.0.40
codegen_flags: <defaults>
</compile_context>

<pallas_src>
import math
import functools

import jax
import jax.numpy as jnp
from jax import lax
from jax.experimental import pallas as pl
from jax.experimental.pallas import tpu as pltpu


def _attend_chunk(qh, kc, vc, m, l, acc, cdt):
    """One online-softmax update for a (TQ, TK) score block.

    qh: (TQ, dh) cdt (1/sqrt(dh) already folded into Wq), kc/vc: (TK, dh) cdt.
    m/l: (TQ, 1) f32 running max / running (unnormalized) sum.
    acc: (TQ, dh) f32 running unnormalized context.
    """
    # QK^T by contracting the last dims of both operands (no explicit transpose).
    s = lax.dot_general(qh, kc, (((1,), (1,)), ((), ())),
                        preferred_element_type=jnp.float32)          # (TQ, TK) f32
    m_new = jnp.maximum(m, jnp.max(s, axis=-1, keepdims=True))
    alpha = jnp.exp(m - m_new)                                       # (TQ, 1)
    p = jnp.exp(s - m_new)                                           # unnormalized probs
    l_new = alpha * l + jnp.sum(p, axis=-1, keepdims=True)
    acc_new = alpha * acc + jnp.dot(p.astype(cdt), vc,
                                    preferred_element_type=jnp.float32)
    return m_new, l_new, acc_new


def _mha_kernel(xq_ref, xkv_ref,
                wq_ref, wk_ref, wv_ref, wo_ref,
                bq_ref, bk_ref, bv_ref, bo_ref,
                o_ref,
                k_sc, v_sc, ctx_sc,
                *, n_heads: int, d_head: int, nk_chunk: int):
    """One (batch, q-tile) grid step.

    xq_ref : (1, TQ, D) bf16      wq_ref/wo_ref : (D, D) bf16 (in, out layout)
    xkv_ref: (1, Nk, D) bf16      wk_ref/wv_ref : (H, D, dh) bf16 (head-split)
    bq/bo  : (1, D) f32           bk/bv         : (H, 1, dh) f32
    k_sc/v_sc : VMEM (H, Nk, dh) bf16 — K/V resident across q tiles.
    ctx_sc    : VMEM (TQ, D) bf16 — per-head contexts for ONE output matmul.
    """
    qt = pl.program_id(1)
    cdt = k_sc.dtype                      # MXU compute dtype (bf16)
    Nk = k_sc.shape[1]
    TQ = xq_ref.shape[1]

    TK = min(nk_chunk, Nk)
    n_full = Nk // TK
    rem = Nk - n_full * TK

    # ---- K/V projection: once per batch element, head by head so the peak
    #      f32 temporary is (Nk, dh), never (Nk, D). Reused by every q tile. ----
    @pl.when(qt == 0)
    def _():
        xkv = xkv_ref[0]                                              # (Nk, D) bf16
        for h in range(n_heads):
            k_h = jnp.dot(xkv, wk_ref[h],
                          preferred_element_type=jnp.float32) + bk_ref[h]
            v_h = jnp.dot(xkv, wv_ref[h],
                          preferred_element_type=jnp.float32) + bv_ref[h]
            k_sc[h] = k_h.astype(cdt)
            v_sc[h] = v_h.astype(cdt)

    # ---- Q projection for this query tile (scale already folded into Wq/bq). ----
    xq = xq_ref[0]                                                    # (TQ, D) bf16
    q = jnp.dot(xq, wq_ref[...], preferred_element_type=jnp.float32) + bq_ref[...]

    # ---- Per-head flash attention over Nk chunks; deferred normalization. ----
    for h in range(n_heads):
        sl = slice(h * d_head, (h + 1) * d_head)
        qh = q[:, sl].astype(cdt)                                     # (TQ, dh)

        m0 = jnp.full((TQ, 1), -jnp.inf, jnp.float32)
        l0 = jnp.zeros((TQ, 1), jnp.float32)
        a0 = jnp.zeros((TQ, d_head), jnp.float32)

        if n_full == 1 and rem == 0:
            # Single-chunk fast path (short Nk): no loop, static full-Nk slices.
            m, l, acc = _attend_chunk(qh, k_sc[h], v_sc[h], m0, l0, a0, cdt)
        else:
            def chunk_body(c, carry, h=h, qh=qh):
                m, l, acc = carry
                start = pl.multiple_of(c * TK, TK)
                kc = k_sc[h, pl.ds(start, TK), :]
                vc = v_sc[h, pl.ds(start, TK), :]
                return _attend_chunk(qh, kc, vc, m, l, acc, cdt)

            m, l, acc = lax.fori_loop(0, n_full, chunk_body, (m0, l0, a0))
            if rem:                                                   # static tail chunk
                kc = k_sc[h, n_full * TK:Nk, :]
                vc = v_sc[h, n_full * TK:Nk, :]
                m, l, acc = _attend_chunk(qh, kc, vc, m, l, acc, cdt)

        # Deferred softmax normalization: scale the (TQ, dh) context, not (TQ, Nk).
        ctx = acc * pl.reciprocal(l, approx=True)
        ctx_sc[:, sl] = ctx.astype(cdt)      # lane-aligned when d_head % 128 == 0

    # ---- One full-depth output projection: (TQ, D) @ (D, D). ----
    out = jnp.dot(ctx_sc[...], wo_ref[...],
                  preferred_element_type=jnp.float32) + bo_ref[...]
    o_ref[0] = out.astype(o_ref.dtype)


def multi_head_attention(x_q, x_kv, params, *, n_heads: int, q_tile: int = 256,
                         nk_chunk: int = 512, compute_dtype=jnp.bfloat16):
    """x_q: (B, Nq, D), x_kv: (B, Nk, D). Returns (B, Nq, D) in x_q.dtype.

    q_tile: query-tile size (256 for v6e/v7x; use 128 on v5e), clipped to Nq.
    nk_chunk: flash-attention key/value chunk length, clipped to Nk.
    """
    B, Nq, D = x_q.shape
    _, Nk, _ = x_kv.shape
    assert D % n_heads == 0
    assert n_heads > 1  # TODO(synk): n_heads == 1 variant of the module has W_out=None.
    d_head = D // n_heads
    scale = 1.0 / math.sqrt(d_head)

    TQ = min(q_tile, Nq)
    nqt = pl.cdiv(Nq, TQ)
    TK = min(nk_chunk, Nk)

    # Layout plumbing in the wrapper (free): pre-transpose to (in, out), fold the
    # 1/sqrt(dh) scale into Wq/bq, head-split Wk/Wv/bk/bv, and cast MXU operands
    # to bf16 so the kernel never transposes, reshapes or rescales.
    wq_t = (params["wq"].T * scale).astype(compute_dtype)                       # (D, D)
    wk_h = params["wk"].T.reshape(D, n_heads, d_head).transpose(1, 0, 2).astype(compute_dtype)
    wv_h = params["wv"].T.reshape(D, n_heads, d_head).transpose(1, 0, 2).astype(compute_dtype)
    wo_t = params["wo"].T.astype(compute_dtype)                                 # (D, D)
    bq = (params["bq"] * scale).astype(jnp.float32)                             # (1, D)
    bk_h = params["bk"].reshape(1, n_heads, d_head).transpose(1, 0, 2).astype(jnp.float32)
    bv_h = params["bv"].reshape(1, n_heads, d_head).transpose(1, 0, 2).astype(jnp.float32)
    bo = params["bo"].astype(jnp.float32)                                       # (1, D)
    xq_c = x_q.astype(compute_dtype)
    xkv_c = x_kv.astype(compute_dtype)

    kernel = functools.partial(_mha_kernel, n_heads=n_heads, d_head=d_head,
                               nk_chunk=nk_chunk)

    # Grid-invariant blocks (weights/biases) and the per-batch x_kv block are
    # single-buffered: no point paying a double buffer for blocks that never
    # (or only once per batch) change.
    single = pl.Buffered(1)
    in_specs = [
        pl.BlockSpec((1, TQ, D), lambda b, t: (b, t, 0)),                        # x_q (q-tiled)
        pl.BlockSpec((1, Nk, D), lambda b, t: (b, 0, 0), pipeline_mode=single),  # x_kv
        pl.BlockSpec((D, D), lambda b, t: (0, 0), pipeline_mode=single),         # Wq (scaled)
        pl.BlockSpec((n_heads, D, d_head), lambda b, t: (0, 0, 0), pipeline_mode=single),  # Wk
        pl.BlockSpec((n_heads, D, d_head), lambda b, t: (0, 0, 0), pipeline_mode=single),  # Wv
        pl.BlockSpec((D, D), lambda b, t: (0, 0), pipeline_mode=single),         # Wo
        pl.BlockSpec((1, D), lambda b, t: (0, 0), pipeline_mode=single),         # bq (scaled)
        pl.BlockSpec((n_heads, 1, d_head), lambda b, t: (0, 0, 0), pipeline_mode=single),  # bk
        pl.BlockSpec((n_heads, 1, d_head), lambda b, t: (0, 0, 0), pipeline_mode=single),  # bv
        pl.BlockSpec((1, D), lambda b, t: (0, 0), pipeline_mode=single),         # bo
    ]

    # Explicit VMEM budget sized to the actual residency (with 1.5x headroom),
    # capped at 64 MiB so it is valid on every generation (v7x physical limit).
    cbytes = jnp.dtype(compute_dtype).itemsize
    obytes = x_q.dtype.itemsize
    resident = (2 * n_heads * Nk * d_head * cbytes            # K/V scratch
                + TQ * D * cbytes                             # ctx scratch
                + Nk * D * cbytes                             # x_kv block (single-buffered)
                + 2 * TQ * D * (cbytes + obytes)              # x_q + out blocks (double-buffered)
                + (2 * D * D + 2 * n_heads * D * d_head) * cbytes    # weights (single-buffered)
                + (2 * D + 2 * n_heads * d_head) * 4)         # biases f32
    temps = (TQ * D * 4                                       # q f32
             + 2 * TQ * TK * 4                                # score / prob chunk
             + 2 * TQ * d_head * 4                            # acc + ctx f32
             + 2 * Nk * d_head * 4)                           # per-head K/V projection temps
    vmem_limit = int(min(64 << 20, max(32 << 20, int(1.5 * (resident + temps)))))

    # Advisory cost estimate for the XLA scheduler.
    proj_flops = 2 * B * D * D * (2 * Nq + 2 * Nk)            # Q, out (Nq) + K, V (Nk)
    attn_flops = 4 * B * Nq * Nk * D                          # QK^T + PV over all heads
    cost = pl.CostEstimate(
        flops=int(proj_flops + attn_flops),
        transcendentals=int(B * n_heads * Nq * Nk),
        bytes_accessed=int((B * Nq * D + B * Nk * D
                            + 2 * D * D + 2 * n_heads * D * d_head) * cbytes
                           + 4 * D * 4 + B * Nq * D * obytes),
    )

    return pl.pallas_call(
        kernel,
        out_shape=jax.ShapeDtypeStruct((B, Nq, D), x_q.dtype),
        grid_spec=pltpu.PrefetchScalarGridSpec(
            num_scalar_prefetch=0,
            grid=(B, nqt),
            in_specs=in_specs,
            out_specs=pl.BlockSpec((1, TQ, D), lambda b, t: (b, t, 0)),
            scratch_shapes=[
                pltpu.VMEM((n_heads, Nk, d_head), compute_dtype),   # K resident
                pltpu.VMEM((n_heads, Nk, d_head), compute_dtype),   # V resident
                pltpu.VMEM((TQ, D), compute_dtype),                 # head contexts
            ],
        ),
        # q-tile axis must stay "arbitrary": K/V scratch carries across q tiles.
        compiler_params=pltpu.CompilerParams(
            dimension_semantics=("parallel", "arbitrary"),
            vmem_limit_bytes=vmem_limit),
        cost_estimate=cost,
    )(xq_c, xkv_c, wq_t, wk_h, wv_h, wo_t, bq, bk_h, bv_h, bo)


def init_params(key, d: int, n_heads: int):
    """Deterministic parameter init mirroring the module's __init__ (xavier)."""
    kq, kk, kv, ko = jax.random.split(key, 4)
    gain = 1.0 / math.sqrt(2.0)
    xav_bound = gain * math.sqrt(6.0 / (d + d))        # xavier_uniform, gain=1/sqrt(2)
    def_bound = 1.0 / math.sqrt(d)                      # default nn.Linear init for W_out
    return {
        "wq": jax.random.uniform(kq, (d, d), jnp.float32, -xav_bound, xav_bound),
        "wk": jax.random.uniform(kk, (d, d), jnp.float32, -xav_bound, xav_bound),
        "wv": jax.random.uniform(kv, (d, d), jnp.float32, -xav_bound, xav_bound),
        "wo": jax.random.uniform(ko, (d, d), jnp.float32, -def_bound, def_bound),
        "bq": jnp.zeros((1, d), jnp.float32),
        "bk": jnp.zeros((1, d), jnp.float32),
        "bv": jnp.zeros((1, d), jnp.float32),
        "bo": jnp.zeros((1, d), jnp.float32),
    }


def reference_mha(x_q, x_kv, params, *, n_heads: int):
    """Pure-JAX f32 reference replicating the PyTorch forward (no compression/dropout)."""
    B, Nq, D = x_q.shape
    _, Nk, _ = x_kv.shape
    dh = D // n_heads

    def lin(x, w, b):
        return x @ w.T + b[0]

    q = lin(x_q, params["wq"], params["bq"])
    k = lin(x_kv, params["wk"], params["bk"])
    v = lin(x_kv, params["wv"], params["bv"])

    def reshape_heads(x, n_tok):
        return (x.reshape(B, n_tok, n_heads, dh).transpose(0, 2, 1, 3)
                 .reshape(B * n_heads, n_tok, dh))

    q = reshape_heads(q, Nq)
    k = reshape_heads(k, Nk)
    v = reshape_heads(v, Nk)
    attn = jax.nn.softmax(q @ k.transpose(0, 2, 1) / math.sqrt(dh), axis=-1)
    x = attn @ v
    x = x.reshape(B, n_heads, Nq, dh).transpose(0, 2, 1, 3).reshape(B, Nq, D)
    return lin(x, params["wo"], params["bo"])


if __name__ == "__main__":
    B, Nq, Nk, D, H = 2, 8, 8, 32, 4   # batch=2, seq=8, hidden=32, 4 heads
    key = jax.random.PRNGKey(0)
    kx, kkv, kp = jax.random.split(key, 3)

    x_q = jax.random.normal(kx, (B, Nq, D), jnp.float32)
    x_kv = jax.random.normal(kkv, (B, Nk, D), jnp.float32)
    params = init_params(kp, D, H)

    out = multi_head_attention(x_q, x_kv, params, n_heads=H)
    out = jax.block_until_ready(out)

    ref = reference_mha(x_q, x_kv, params, n_heads=H)
    assert out.shape == (B, Nq, D)
    assert out.dtype == x_q.dtype
    max_err = float(jnp.max(jnp.abs(out - ref)))
    # bf16 MXU inputs (f32 accumulation, f32 softmax stats, approx reciprocal)
    # vs. a pure-f32 reference: tolerance at the bf16 rounding scale.
    assert jnp.allclose(out, ref, atol=5e-2, rtol=5e-2), f"mismatch, max abs err {max_err}"

    # TODO(synk): key/value compression and dropout are inactive in this
    # configuration (compression=None, dropout=0.0), matching the reference branch taken.
    print("KERNEL_OK")
</pallas_src>

<mosaic_0001>
module attributes {stable_mosaic.version = 11 : i64} {
  func.func @_mha_kernel(%arg0: i32, %arg1: i32, %arg2: memref<1x8x32xbf16, #tpu.memory_space<vmem>>, %arg3: memref<1x8x32xbf16, #tpu.memory_space<vmem>>, %arg4: memref<32x32xbf16, #tpu.memory_space<vmem>>, %arg5: memref<4x32x8xbf16, #tpu.memory_space<vmem>>, %arg6: memref<4x32x8xbf16, #tpu.memory_space<vmem>>, %arg7: memref<32x32xbf16, #tpu.memory_space<vmem>>, %arg8: memref<1x32xf32, #tpu.memory_space<vmem>>, %arg9: memref<4x1x8xf32, #tpu.memory_space<vmem>>, %arg10: memref<4x1x8xf32, #tpu.memory_space<vmem>>, %arg11: memref<1x32xf32, #tpu.memory_space<vmem>>, %arg12: memref<1x8x32xf32, #tpu.memory_space<vmem>>, %arg13: memref<4x8x8xbf16, #tpu.memory_space<vmem>>, %arg14: memref<4x8x8xbf16, #tpu.memory_space<vmem>>, %arg15: memref<8x32xbf16, #tpu.memory_space<vmem>>) attributes {dimension_semantics = [#tpu.dimension_semantics<parallel>, #tpu.dimension_semantics<arbitrary>], iteration_bounds = array<i64: 2, 1>, scalar_prefetch = 0 : i64, scratch_operands = 3 : i64, tpu.core_type = #tpu.core_type<tc>, window_params = [{transform_indices = @transform_0, window_bounds = array<i64: 1, 8, 32>}, {pipeline_mode = #tpu.pipeline_mode<synchronous>, transform_indices = @transform_1, window_bounds = array<i64: 1, 8, 32>}, {pipeline_mode = #tpu.pipeline_mode<synchronous>, transform_indices = @transform_2, window_bounds = array<i64: 32, 32>}, {pipeline_mode = #tpu.pipeline_mode<synchronous>, transform_indices = @transform_3, window_bounds = array<i64: 4, 32, 8>}, {pipeline_mode = #tpu.pipeline_mode<synchronous>, transform_indices = @transform_4, window_bounds = array<i64: 4, 32, 8>}, {pipeline_mode = #tpu.pipeline_mode<synchronous>, transform_indices = @transform_5, window_bounds = array<i64: 32, 32>}, {pipeline_mode = #tpu.pipeline_mode<synchronous>, transform_indices = @transform_6, window_bounds = array<i64: 1, 32>}, {pipeline_mode = #tpu.pipeline_mode<synchronous>, transform_indices = @transform_7, window_bounds = array<i64: 4, 1, 8>}, {pipeline_mode = #tpu.pipeline_mode<synchronous>, transform_indices = @transform_8, window_bounds = array<i64: 4, 1, 8>}, {pipeline_mode = #tpu.pipeline_mode<synchronous>, transform_indices = @transform_9, window_bounds = array<i64: 1, 32>}, {transform_indices = @transform_10, window_bounds = array<i64: 1, 8, 32>}]} {
    %c0_i32 = arith.constant 0 : i32
    %0 = arith.cmpi eq, %arg1, %c0_i32 : i32
    %1 = arith.extui %0 : i1 to i32
    %c0_i32_0 = arith.constant 0 : i32
    %2 = arith.cmpi ne, %1, %c0_i32_0 : i32
    scf.if %2 {
      %c0_71 = arith.constant 0 : index
      %c0_72 = arith.constant 0 : index
      %c0_73 = arith.constant 0 : index
      %147 = vector.load %arg3[%c0_71, %c0_72, %c0_73] : memref<1x8x32xbf16, #tpu.memory_space<vmem>>, vector<1x8x32xbf16>
      %148 = vector.shape_cast %147 : vector<1x8x32xbf16> to vector<8x32xbf16>
      %c0_74 = arith.constant 0 : index
      %c0_75 = arith.constant 0 : index
      %c0_76 = arith.constant 0 : index
      %149 = vector.load %arg5[%c0_74, %c0_75, %c0_76] : memref<4x32x8xbf16, #tpu.memory_space<vmem>>, vector<1x32x8xbf16>
      %150 = vector.shape_cast %149 : vector<1x32x8xbf16> to vector<32x8xbf16>
      %cst_77 = arith.constant dense<0.000000e+00> : vector<8x8xf32>
      %151 = tpu.matmul %148, %150, %cst_77 {dimension_numbers = #tpu.dot_dimension_numbers<[1], [0], [0], [1], [0, 0, 1, 1], [], []>} : vector<8x32xbf16>, vector<32x8xbf16>, vector<8x8xf32> -> vector<8x8xf32>
      %c0_78 = arith.constant 0 : index
      %c0_79 = arith.constant 0 : index
      %c0_80 = arith.constant 0 : index
      %152 = vector.load %arg9[%c0_78, %c0_79, %c0_80] : memref<4x1x8xf32, #tpu.memory_space<vmem>>, vector<1x1x8xf32>
      %153 = vector.shape_cast %152 : vector<1x1x8xf32> to vector<1x8xf32>
      %154 = vector.broadcast %153 : vector<1x8xf32> to vector<8x8xf32>
      %155 = arith.addf %151, %154 : vector<8x8xf32>
      %c0_81 = arith.constant 0 : index
      %c0_82 = arith.constant 0 : index
      %c0_83 = arith.constant 0 : index
      %156 = vector.load %arg6[%c0_81, %c0_82, %c0_83] : memref<4x32x8xbf16, #tpu.memory_space<vmem>>, vector<1x32x8xbf16>
      %157 = vector.shape_cast %156 : vector<1x32x8xbf16> to vector<32x8xbf16>
      %cst_84 = arith.constant dense<0.000000e+00> : vector<8x8xf32>
      %158 = tpu.matmul %148, %157, %cst_84 {dimension_numbers = #tpu.dot_dimension_numbers<[1], [0], [0], [1], [0, 0, 1, 1], [], []>} : vector<8x32xbf16>, vector<32x8xbf16>, vector<8x8xf32> -> vector<8x8xf32>
      %c0_85 = arith.constant 0 : index
      %c0_86 = arith.constant 0 : index
      %c0_87 = arith.constant 0 : index
      %159 = vector.load %arg10[%c0_85, %c0_86, %c0_87] : memref<4x1x8xf32, #tpu.memory_space<vmem>>, vector<1x1x8xf32>
      %160 = vector.shape_cast %159 : vector<1x1x8xf32> to vector<1x8xf32>
      %161 = vector.broadcast %160 : vector<1x8xf32> to vector<8x8xf32>
      %162 = arith.addf %158, %161 : vector<8x8xf32>
      %163 = arith.truncf %155 : vector<8x8xf32> to vector<8x8xbf16>
      %c0_88 = arith.constant 0 : index
      %c0_89 = arith.constant 0 : index
      %c0_90 = arith.constant 0 : index
      %164 = vector.load %arg13[%c0_88, %c0_89, %c0_90] : memref<4x8x8xbf16, #tpu.memory_space<vmem>>, vector<1x8x8xbf16>
      %165 = vector.shape_cast %164 : vector<1x8x8xbf16> to vector<8x8xbf16>
      %166 = vector.shape_cast %163 : vector<8x8xbf16> to vector<1x8x8xbf16>
      tpu.vector_store %arg13[%c0_88, %c0_89, %c0_90], %166 {strides = array<i32>} : memref<4x8x8xbf16, #tpu.memory_space<vmem>>, vector<1x8x8xbf16>,
      %167 = arith.truncf %162 : vector<8x8xf32> to vector<8x8xbf16>
      %c0_91 = arith.constant 0 : index
      %c0_92 = arith.constant 0 : index
      %c0_93 = arith.constant 0 : index
      %168 = vector.load %arg14[%c0_91, %c0_92, %c0_93] : memref<4x8x8xbf16, #tpu.memory_space<vmem>>, vector<1x8x8xbf16>
      %169 = vector.shape_cast %168 : vector<1x8x8xbf16> to vector<8x8xbf16>
      %170 = vector.shape_cast %167 : vector<8x8xbf16> to vector<1x8x8xbf16>
      tpu.vector_store %arg14[%c0_91, %c0_92, %c0_93], %170 {strides = array<i32>} : memref<4x8x8xbf16, #tpu.memory_space<vmem>>, vector<1x8x8xbf16>,
      %c1_94 = arith.constant 1 : index
      %c0_95 = arith.constant 0 : index
      %c0_96 = arith.constant 0 : index
      %171 = vector.load %arg5[%c1_94, %c0_95, %c0_96] : memref<4x32x8xbf16, #tpu.memory_space<vmem>>, vector<1x32x8xbf16>
      %172 = vector.shape_cast %171 : vector<1x32x8xbf16> to vector<32x8xbf16>
      %cst_97 = arith.constant dense<0.000000e+00> : vector<8x8xf32>
      %173 = tpu.matmul %148, %172, %cst_97 {dimension_numbers = #tpu.dot_dimension_numbers<[1], [0], [0], [1], [0, 0, 1, 1], [], []>} : vector<8x32xbf16>, vector<32x8xbf16>, vector<8x8xf32> -> vector<8x8xf32>
      %c1_98 = arith.constant 1 : index
      %c0_99 = arith.constant 0 : index
      %c0_100 = arith.constant 0 : index
      %174 = vector.load %arg9[%c1_98, %c0_99, %c0_100] : memref<4x1x8xf32, #tpu.memory_space<vmem>>, vector<1x1x8xf32>
      %175 = vector.shape_cast %174 : vector<1x1x8xf32> to vector<1x8xf32>
      %176 = vector.broadcast %175 : vector<1x8xf32> to vector<8x8xf32>
      %177 = arith.addf %173, %176 : vector<8x8xf32>
      %c1_101 = arith.constant 1 : index
      %c0_102 = arith.constant 0 : index
      %c0_103 = arith.constant 0 : index
      %178 = vector.load %arg6[%c1_101, %c0_102, %c0_103] : memref<4x32x8xbf16, #tpu.memory_space<vmem>>, vector<1x32x8xbf16>
      %179 = vector.shape_cast %178 : vector<1x32x8xbf16> to vector<32x8xbf16>
      %cst_104 = arith.constant dense<0.000000e+00> : vector<8x8xf32>
      %180 = tpu.matmul %148, %179, %cst_104 {dimension_numbers = #tpu.dot_dimension_numbers<[1], [0], [0], [1], [0, 0, 1, 1], [], []>} : vector<8x32xbf16>, vector<32x8xbf16>, vector<8x8xf32> -> vector<8x8xf32>
      %c1_105 = arith.constant 1 : index
      %c0_106 = arith.constant 0 : index
      %c0_107 = arith.constant 0 : index
      %181 = vector.load %arg10[%c1_105, %c0_106, %c0_107] : memref<4x1x8xf32, #tpu.memory_space<vmem>>, vector<1x1x8xf32>
      %182 = vector.shape_cast %181 : vector<1x1x8xf32> to vector<1x8xf32>
      %183 = vector.broadcast %182 : vector<1x8xf32> to vector<8x8xf32>
      %184 = arith.addf %180, %183 : vector<8x8xf32>
      %185 = arith.truncf %177 : vector<8x8xf32> to vector<8x8xbf16>
      %c1_108 = arith.constant 1 : index
      %c0_109 = arith.constant 0 : index
      %c0_110 = arith.constant 0 : index
      %186 = vector.load %arg13[%c1_108, %c0_109, %c0_110] : memref<4x8x8xbf16, #tpu.memory_space<vmem>>, vector<1x8x8xbf16>
      %187 = vector.shape_cast %186 : vector<1x8x8xbf16> to vector<8x8xbf16>
      %188 = vector.shape_cast %185 : vector<8x8xbf16> to vector<1x8x8xbf16>
      tpu.vector_store %arg13[%c1_108, %c0_109, %c0_110], %188 {strides = array<i32>} : memref<4x8x8xbf16, #tpu.memory_space<vmem>>, vector<1x8x8xbf16>,
      %189 = arith.truncf %184 : vector<8x8xf32> to vector<8x8xbf16>
      %c1_111 = arith.constant 1 : index
      %c0_112 = arith.constant 0 : index
      %c0_113 = arith.constant 0 : index
      %190 = vector.load %arg14[%c1_111, %c0_112, %c0_113] : memref<4x8x8xbf16, #tpu.memory_space<vmem>>, vector<1x8x8xbf16>
      %191 = vector.shape_cast %190 : vector<1x8x8xbf16> to vector<8x8xbf16>
      %192 = vector.shape_cast %189 : vector<8x8xbf16> to vector<1x8x8xbf16>
      tpu.vector_store %arg14[%c1_111, %c0_112, %c0_113], %192 {strides = array<i32>} : memref<4x8x8xbf16, #tpu.memory_space<vmem>>, vector<1x8x8xbf16>,
      %c2_114 = arith.constant 2 : index
      %c0_115 = arith.constant 0 : index
      %c0_116 = arith.constant 0 : index
      %193 = vector.load %arg5[%c2_114, %c0_115, %c0_116] : memref<4x32x8xbf16, #tpu.memory_space<vmem>>, vector<1x32x8xbf16>
      %194 = vector.shape_cast %193 : vector<1x32x8xbf16> to vector<32x8xbf16>
      %cst_117 = arith.constant dense<0.000000e+00> : vector<8x8xf32>
      %195 = tpu.matmul %148, %194, %cst_117 {dimension_numbers = #tpu.dot_dimension_numbers<[1], [0], [0], [1], [0, 0, 1, 1], [], []>} : vector<8x32xbf16>, vector<32x8xbf16>, vector<8x8xf32> -> vector<8x8xf32>
      %c2_118 = arith.constant 2 : index
      %c0_119 = arith.constant 0 : index
      %c0_120 = arith.constant 0 : index
      %196 = vector.load %arg9[%c2_118, %c0_119, %c0_120] : memref<4x1x8xf32, #tpu.memory_space<vmem>>, vector<1x1x8xf32>
      %197 = vector.shape_cast %196 : vector<1x1x8xf32> to vector<1x8xf32>
      %198 = vector.broadcast %197 : vector<1x8xf32> to vector<8x8xf32>
      %199 = arith.addf %195, %198 : vector<8x8xf32>
      %c2_121 = arith.constant 2 : index
      %c0_122 = arith.constant 0 : index
      %c0_123 = arith.constant 0 : index
      %200 = vector.load %arg6[%c2_121, %c0_122, %c0_123] : memref<4x32x8xbf16, #tpu.memory_space<vmem>>, vector<1x32x8xbf16>
      %201 = vector.shape_cast %200 : vector<1x32x8xbf16> to vector<32x8xbf16>
      %cst_124 = arith.constant dense<0.000000e+00> : vector<8x8xf32>
      %202 = tpu.matmul %148, %201, %cst_124 {dimension_numbers = #tpu.dot_dimension_numbers<[1], [0], [0], [1], [0, 0, 1, 1], [], []>} : vector<8x32xbf16>, vector<32x8xbf16>, vector<8x8xf32> -> vector<8x8xf32>
      %c2_125 = arith.constant 2 : index
      %c0_126 = arith.constant 0 : index
      %c0_127 = arith.constant 0 : index
      %203 = vector.load %arg10[%c2_125, %c0_126, %c0_127] : memref<4x1x8xf32, #tpu.memory_space<vmem>>, vector<1x1x8xf32>
      %204 = vector.shape_cast %203 : vector<1x1x8xf32> to vector<1x8xf32>
      %205 = vector.broadcast %204 : vector<1x8xf32> to vector<8x8xf32>
      %206 = arith.addf %202, %205 : vector<8x8xf32>
      %207 = arith.truncf %199 : vector<8x8xf32> to vector<8x8xbf16>
      %c2_128 = arith.constant 2 : index
      %c0_129 = arith.constant 0 : index
      %c0_130 = arith.constant 0 : index
      %208 = vector.load %arg13[%c2_128, %c0_129, %c0_130] : memref<4x8x8xbf16, #tpu.memory_space<vmem>>, vector<1x8x8xbf16>
      %209 = vector.shape_cast %208 : vector<1x8x8xbf16> to vector<8x8xbf16>
      %210 = vector.shape_cast %207 : vector<8x8xbf16> to vector<1x8x8xbf16>
      tpu.vector_store %arg13[%c2_128, %c0_129, %c0_130], %210 {strides = array<i32>} : memref<4x8x8xbf16, #tpu.memory_space<vmem>>, vector<1x8x8xbf16>,
      %211 = arith.truncf %206 : vector<8x8xf32> to vector<8x8xbf16>
      %c2_131 = arith.constant 2 : index
      %c0_132 = arith.constant 0 : index
      %c0_133 = arith.constant 0 : index
      %212 = vector.load %arg14[%c2_131, %c0_132, %c0_133] : memref<4x8x8xbf16, #tpu.memory_space<vmem>>, vector<1x8x8xbf16>
      %213 = vector.shape_cast %212 : vector<1x8x8xbf16> to vector<8x8xbf16>
      %214 = vector.shape_cast %211 : vector<8x8xbf16> to vector<1x8x8xbf16>
      tpu.vector_store %arg14[%c2_131, %c0_132, %c0_133], %214 {strides = array<i32>} : memref<4x8x8xbf16, #tpu.memory_space<vmem>>, vector<1x8x8xbf16>,
      %c3_134 = arith.constant 3 : index
      %c0_135 = arith.constant 0 : index
      %c0_136 = arith.constant 0 : index
      %215 = vector.load %arg5[%c3_134, %c0_135, %c0_136] : memref<4x32x8xbf16, #tpu.memory_space<vmem>>, vector<1x32x8xbf16>
      %216 = vector.shape_cast %215 : vector<1x32x8xbf16> to vector<32x8xbf16>
      %cst_137 = arith.constant dense<0.000000e+00> : vector<8x8xf32>
      %217 = tpu.matmul %148, %216, %cst_137 {dimension_numbers = #tpu.dot_dimension_numbers<[1], [0], [0], [1], [0, 0, 1, 1], [], []>} : vector<8x32xbf16>, vector<32x8xbf16>, vector<8x8xf32> -> vector<8x8xf32>
      %c3_138 = arith.constant 3 : index
      %c0_139 = arith.constant 0 : index
      %c0_140 = arith.constant 0 : index
      %218 = vector.load %arg9[%c3_138, %c0_139, %c0_140] : memref<4x1x8xf32, #tpu.memory_space<vmem>>, vector<1x1x8xf32>
      %219 = vector.shape_cast %218 : vector<1x1x8xf32> to vector<1x8xf32>
      %220 = vector.broadcast %219 : vector<1x8xf32> to vector<8x8xf32>
      %221 = arith.addf %217, %220 : vector<8x8xf32>
      %c3_141 = arith.constant 3 : index
      %c0_142 = arith.constant 0 : index
      %c0_143 = arith.constant 0 : index
      %222 = vector.load %arg6[%c3_141, %c0_142, %c0_143] : memref<4x32x8xbf16, #tpu.memory_space<vmem>>, vector<1x32x8xbf16>
      %223 = vector.shape_cast %222 : vector<1x32x8xbf16> to vector<32x8xbf16>
      %cst_144 = arith.constant dense<0.000000e+00> : vector<8x8xf32>
      %224 = tpu.matmul %148, %223, %cst_144 {dimension_numbers = #tpu.dot_dimension_numbers<[1], [0], [0], [1], [0, 0, 1, 1], [], []>} : vector<8x32xbf16>, vector<32x8xbf16>, vector<8x8xf32> -> vector<8x8xf32>
      %c3_145 = arith.constant 3 : index
      %c0_146 = arith.constant 0 : index
      %c0_147 = arith.constant 0 : index
      %225 = vector.load %arg10[%c3_145, %c0_146, %c0_147] : memref<4x1x8xf32, #tpu.memory_space<vmem>>, vector<1x1x8xf32>
      %226 = vector.shape_cast %225 : vector<1x1x8xf32> to vector<1x8xf32>
      %227 = vector.broadcast %226 : vector<1x8xf32> to vector<8x8xf32>
      %228 = arith.addf %224, %227 : vector<8x8xf32>
      %229 = arith.truncf %221 : vector<8x8xf32> to vector<8x8xbf16>
      %c3_148 = arith.constant 3 : index
      %c0_149 = arith.constant 0 : index
      %c0_150 = arith.constant 0 : index
      %230 = vector.load %arg13[%c3_148, %c0_149, %c0_150] : memref<4x8x8xbf16, #tpu.memory_space<vmem>>, vector<1x8x8xbf16>
      %231 = vector.shape_cast %230 : vector<1x8x8xbf16> to vector<8x8xbf16>
      %232 = vector.shape_cast %229 : vector<8x8xbf16> to vector<1x8x8xbf16>
      tpu.vector_store %arg13[%c3_148, %c0_149, %c0_150], %232 {strides = array<i32>} : memref<4x8x8xbf16, #tpu.memory_space<vmem>>, vector<1x8x8xbf16>,
      %233 = arith.truncf %228 : vector<8x8xf32> to vector<8x8xbf16>
      %c3_151 = arith.constant 3 : index
      %c0_152 = arith.constant 0 : index
      %c0_153 = arith.constant 0 : index
      %234 = vector.load %arg14[%c3_151, %c0_152, %c0_153] : memref<4x8x8xbf16, #tpu.memory_space<vmem>>, vector<1x8x8xbf16>
      %235 = vector.shape_cast %234 : vector<1x8x8xbf16> to vector<8x8xbf16>
      %236 = vector.shape_cast %233 : vector<8x8xbf16> to vector<1x8x8xbf16>
      tpu.vector_store %arg14[%c3_151, %c0_152, %c0_153], %236 {strides = array<i32>} : memref<4x8x8xbf16, #tpu.memory_space<vmem>>, vector<1x8x8xbf16>,
    } else {
    }
    %c0 = arith.constant 0 : index
    %c0_1 = arith.constant 0 : index
    %c0_2 = arith.constant 0 : index
    %3 = vector.load %arg2[%c0, %c0_1, %c0_2] : memref<1x8x32xbf16, #tpu.memory_space<vmem>>, vector<1x8x32xbf16>
    %4 = vector.shape_cast %3 : vector<1x8x32xbf16> to vector<8x32xbf16>
    %c0_3 = arith.constant 0 : index
    %c0_4 = arith.constant 0 : index
    %5 = vector.load %arg4[%c0_3, %c0_4] : memref<32x32xbf16, #tpu.memory_space<vmem>>, vector<32x32xbf16>
    %cst = arith.constant dense<0.000000e+00> : vector<8x32xf32>
    %6 = tpu.matmul %4, %5, %cst {dimension_numbers = #tpu.dot_dimension_numbers<[1], [0], [0], [1], [0, 0, 1, 1], [], []>} : vector<8x32xbf16>, vector<32x32xbf16>, vector<8x32xf32> -> vector<8x32xf32>
    %c0_5 = arith.constant 0 : index
    %c0_6 = arith.constant 0 : index
    %7 = vector.load %arg8[%c0_5, %c0_6] : memref<1x32xf32, #tpu.memory_space<vmem>>, vector<1x32xf32>
    %8 = vector.broadcast %7 : vector<1x32xf32> to vector<8x32xf32>
    %9 = arith.addf %6, %8 : vector<8x32xf32>
    %10 = vector.extract_strided_slice %9 {offsets = [0, 0], sizes = [8, 8], strides = [1, 1]} : vector<8x32xf32> to vector<8x8xf32>
    %11 = arith.truncf %10 : vector<8x8xf32> to vector<8x8xbf16>
    %cst_7 = arith.constant 0xFF800000 : f32
    %12 = vector.broadcast %cst_7 : f32 to vector<8x1xf32>
    %cst_8 = arith.constant 0.000000e+00 : f32
    %13 = vector.broadcast %cst_8 : f32 to vector<8x1xf32>
    %cst_9 = arith.constant 0.000000e+00 : f32
    %14 = vector.broadcast %cst_9 : f32 to vector<8x8xf32>
    %c0_10 = arith.constant 0 : index
    %c0_11 = arith.constant 0 : index
    %c0_12 = arith.constant 0 : index
    %15 = vector.load %arg13[%c0_10, %c0_11, %c0_12] : memref<4x8x8xbf16, #tpu.memory_space<vmem>>, vector<1x8x8xbf16>
    %16 = vector.shape_cast %15 : vector<1x8x8xbf16> to vector<8x8xbf16>
    %c0_13 = arith.constant 0 : index
    %c0_14 = arith.constant 0 : index
    %c0_15 = arith.constant 0 : index
    %17 = vector.load %arg14[%c0_13, %c0_14, %c0_15] : memref<4x8x8xbf16, #tpu.memory_space<vmem>>, vector<1x8x8xbf16>
    %18 = vector.shape_cast %17 : vector<1x8x8xbf16> to vector<8x8xbf16>
    %cst_16 = arith.constant dense<0.000000e+00> : vector<8x8xf32>
    %19 = tpu.matmul %11, %16, %cst_16 {dimension_numbers = #tpu.dot_dimension_numbers<[1], [1], [0], [0], [0, 0, 1, 0], [], []>} : vector<8x8xbf16>, vector<8x8xbf16>, vector<8x8xf32> -> vector<8x8xf32>
    %cst_17 = arith.constant dense<0xFF800000> : vector<8xf32>
    %20 = vector.multi_reduction <maximumf>, %19, %cst_17 [1] : vector<8x8xf32> to vector<8xf32>
    %21 = vector.shape_cast %20 : vector<8xf32> to vector<8x1xf32>
    %22 = arith.maximumf %12, %21 : vector<8x1xf32>
    %23 = arith.subf %12, %22 : vector<8x1xf32>
    %24 = math.exp %23 : vector<8x1xf32>
    %25 = vector.broadcast %22 : vector<8x1xf32> to vector<8x8xf32>
    %26 = arith.subf %19, %25 : vector<8x8xf32>
    %27 = math.exp %26 : vector<8x8xf32>
    %28 = arith.mulf %24, %13 : vector<8x1xf32>
    %cst_18 = arith.constant dense<0.000000e+00> : vector<8xf32>
    %29 = vector.multi_reduction <add>, %27, %cst_18 [1] : vector<8x8xf32> to vector<8xf32>
    %30 = vector.shape_cast %29 : vector<8xf32> to vector<8x1xf32>
    %31 = arith.addf %28, %30 : vector<8x1xf32>
    %32 = vector.broadcast %24 : vector<8x1xf32> to vector<8x8xf32>
    %33 = arith.mulf %32, %14 : vector<8x8xf32>
    %34 = arith.truncf %27 : vector<8x8xf32> to vector<8x8xbf16>
    %cst_19 = arith.constant dense<0.000000e+00> : vector<8x8xf32>
    %35 = tpu.matmul %34, %18, %cst_19 {dimension_numbers = #tpu.dot_dimension_numbers<[1], [0], [0], [1], [0, 0, 1, 1], [], []>} : vector<8x8xbf16>, vector<8x8xbf16>, vector<8x8xf32> -> vector<8x8xf32>
    %36 = arith.addf %33, %35 : vector<8x8xf32>
    %37 = tpu.reciprocal %31 {approx = true} : vector<8x1xf32> -> vector<8x1xf32>
    %38 = vector.broadcast %37 : vector<8x1xf32> to vector<8x8xf32>
    %39 = arith.mulf %36, %38 : vector<8x8xf32>
    %40 = arith.truncf %39 : vector<8x8xf32> to vector<8x8xbf16>
    %c0_20 = arith.constant 0 : index
    %c0_21 = arith.constant 0 : index
    %41 = vector.load %arg15[%c0_20, %c0_21] : memref<8x32xbf16, #tpu.memory_space<vmem>>, vector<8x8xbf16>
    tpu.vector_store %arg15[%c0_20, %c0_21], %40 {strides = array<i32>} : memref<8x32xbf16, #tpu.memory_space<vmem>>, vector<8x8xbf16>,
    %42 = vector.extract_strided_slice %9 {offsets = [0, 8], sizes = [8, 8], strides = [1, 1]} : vector<8x32xf32> to vector<8x8xf32>
    %43 = arith.truncf %42 : vector<8x8xf32> to vector<8x8xbf16>
    %cst_22 = arith.constant 0xFF800000 : f32
    %44 = vector.broadcast %cst_22 : f32 to vector<8x1xf32>
    %cst_23 = arith.constant 0.000000e+00 : f32
    %45 = vector.broadcast %cst_23 : f32 to vector<8x1xf32>
    %cst_24 = arith.constant 0.000000e+00 : f32
    %46 = vector.broadcast %cst_24 : f32 to vector<8x8xf32>
    %c1 = arith.constant 1 : index
    %c0_25 = arith.constant 0 : index
    %c0_26 = arith.constant 0 : index
    %47 = vector.load %arg13[%c1, %c0_25, %c0_26] : memref<4x8x8xbf16, #tpu.memory_space<vmem>>, vector<1x8x8xbf16>
    %48 = vector.shape_cast %47 : vector<1x8x8xbf16> to vector<8x8xbf16>
    %c1_27 = arith.constant 1 : index
    %c0_28 = arith.constant 0 : index
    %c0_29 = arith.constant 0 : index
    %49 = vector.load %arg14[%c1_27, %c0_28, %c0_29] : memref<4x8x8xbf16, #tpu.memory_space<vmem>>, vector<1x8x8xbf16>
    %50 = vector.shape_cast %49 : vector<1x8x8xbf16> to vector<8x8xbf16>
    %cst_30 = arith.constant dense<0.000000e+00> : vector<8x8xf32>
    %51 = tpu.matmul %43, %48, %cst_30 {dimension_numbers = #tpu.dot_dimension_numbers<[1], [1], [0], [0], [0, 0, 1, 0], [], []>} : vector<8x8xbf16>, vector<8x8xbf16>, vector<8x8xf32> -> vector<8x8xf32>
    %cst_31 = arith.constant dense<0xFF800000> : vector<8xf32>
    %52 = vector.multi_reduction <maximumf>, %51, %cst_31 [1] : vector<8x8xf32> to vector<8xf32>
    %53 = vector.shape_cast %52 : vector<8xf32> to vector<8x1xf32>
    %54 = arith.maximumf %44, %53 : vector<8x1xf32>
    %55 = arith.subf %44, %54 : vector<8x1xf32>
    %56 = math.exp %55 : vector<8x1xf32>
    %57 = vector.broadcast %54 : vector<8x1xf32> to vector<8x8xf32>
    %58 = arith.subf %51, %57 : vector<8x8xf32>
    %59 = math.exp %58 : vector<8x8xf32>
    %60 = arith.mulf %56, %45 : vector<8x1xf32>
    %cst_32 = arith.constant dense<0.000000e+00> : vector<8xf32>
    %61 = vector.multi_reduction <add>, %59, %cst_32 [1] : vector<8x8xf32> to vector<8xf32>
    %62 = vector.shape_cast %61 : vector<8xf32> to vector<8x1xf32>
    %63 = arith.addf %60, %62 : vector<8x1xf32>
    %64 = vector.broadcast %56 : vector<8x1xf32> to vector<8x8xf32>
    %65 = arith.mulf %64, %46 : vector<8x8xf32>
    %66 = arith.truncf %59 : vector<8x8xf32> to vector<8x8xbf16>
    %cst_33 = arith.constant dense<0.000000e+00> : vector<8x8xf32>
    %67 = tpu.matmul %66, %50, %cst_33 {dimension_numbers = #tpu.dot_dimension_numbers<[1], [0], [0], [1], [0, 0, 1, 1], [], []>} : vector<8x8xbf16>, vector<8x8xbf16>, vector<8x8xf32> -> vector<8x8xf32>
    %68 = arith.addf %65, %67 : vector<8x8xf32>
    %69 = tpu.reciprocal %63 {approx = true} : vector<8x1xf32> -> vector<8x1xf32>
    %70 = vector.broadcast %69 : vector<8x1xf32> to vector<8x8xf32>
    %71 = arith.mulf %68, %70 : vector<8x8xf32>
    %72 = arith.truncf %71 : vector<8x8xf32> to vector<8x8xbf16>
    %c0_34 = arith.constant 0 : index
    %c8 = arith.constant 8 : index
    %73 = vector.load %arg15[%c0_34, %c8] : memref<8x32xbf16, #tpu.memory_space<vmem>>, vector<8x8xbf16>
    tpu.vector_store %arg15[%c0_34, %c8], %72 {strides = array<i32>} : memref<8x32xbf16, #tpu.memory_space<vmem>>, vector<8x8xbf16>,
    %74 = vector.extract_strided_slice %9 {offsets = [0, 16], sizes = [8, 8], strides = [1, 1]} : vector<8x32xf32> to vector<8x8xf32>
    %75 = arith.truncf %74 : vector<8x8xf32> to vector<8x8xbf16>
    %cst_35 = arith.constant 0xFF800000 : f32
    %76 = vector.broadcast %cst_35 : f32 to vector<8x1xf32>
    %cst_36 = arith.constant 0.000000e+00 : f32
    %77 = vector.broadcast %cst_36 : f32 to vector<8x1xf32>
    %cst_37 = arith.constant 0.000000e+00 : f32
    %78 = vector.broadcast %cst_37 : f32 to vector<8x8xf32>
    %c2 = arith.constant 2 : index
    %c0_38 = arith.constant 0 : index
    %c0_39 = arith.constant 0 : index
    %79 = vector.load %arg13[%c2, %c0_38, %c0_39] : memref<4x8x8xbf16, #tpu.memory_space<vmem>>, vector<1x8x8xbf16>
    %80 = vector.shape_cast %79 : vector<1x8x8xbf16> to vector<8x8xbf16>
    %c2_40 = arith.constant 2 : index
    %c0_41 = arith.constant 0 : index
    %c0_42 = arith.constant 0 : index
    %81 = vector.load %arg14[%c2_40, %c0_41, %c0_42] : memref<4x8x8xbf16, #tpu.memory_space<vmem>>, vector<1x8x8xbf16>
    %82 = vector.shape_cast %81 : vector<1x8x8xbf16> to vector<8x8xbf16>
    %cst_43 = arith.constant dense<0.000000e+00> : vector<8x8xf32>
    %83 = tpu.matmul %75, %80, %cst_43 {dimension_numbers = #tpu.dot_dimension_numbers<[1], [1], [0], [0], [0, 0, 1, 0], [], []>} : vector<8x8xbf16>, vector<8x8xbf16>, vector<8x8xf32> -> vector<8x8xf32>
    %cst_44 = arith.constant dense<0xFF800000> : vector<8xf32>
    %84 = vector.multi_reduction <maximumf>, %83, %cst_44 [1] : vector<8x8xf32> to vector<8xf32>
    %85 = vector.shape_cast %84 : vector<8xf32> to vector<8x1xf32>
    %86 = arith.maximumf %76, %85 : vector<8x1xf32>
    %87 = arith.subf %76, %86 : vector<8x1xf32>
    %88 = math.exp %87 : vector<8x1xf32>
    %89 = vector.broadcast %86 : vector<8x1xf32> to vector<8x8xf32>
    %90 = arith.subf %83, %89 : vector<8x8xf32>
    %91 = math.exp %90 : vector<8x8xf32>
    %92 = arith.mulf %88, %77 : vector<8x1xf32>
    %cst_45 = arith.constant dense<0.000000e+00> : vector<8xf32>
    %93 = vector.multi_reduction <add>, %91, %cst_45 [1] : vector<8x8xf32> to vector<8xf32>
    %94 = vector.shape_cast %93 : vector<8xf32> to vector<8x1xf32>
    %95 = arith.addf %92, %94 : vector<8x1xf32>
    %96 = vector.broadcast %88 : vector<8x1xf32> to vector<8x8xf32>
    %97 = arith.mulf %96, %78 : vector<8x8xf32>
    %98 = arith.truncf %91 : vector<8x8xf32> to vector<8x8xbf16>
    %cst_46 = arith.constant dense<0.000000e+00> : vector<8x8xf32>
    %99 = tpu.matmul %98, %82, %cst_46 {dimension_numbers = #tpu.dot_dimension_numbers<[1], [0], [0], [1], [0, 0, 1, 1], [], []>} : vector<8x8xbf16>, vector<8x8xbf16>, vector<8x8xf32> -> vector<8x8xf32>
    %100 = arith.addf %97, %99 : vector<8x8xf32>
    %101 = tpu.reciprocal %95 {approx = true} : vector<8x1xf32> -> vector<8x1xf32>
    %102 = vector.broadcast %101 : vector<8x1xf32> to vector<8x8xf32>
    %103 = arith.mulf %100, %102 : vector<8x8xf32>
    %104 = arith.truncf %103 : vector<8x8xf32> to vector<8x8xbf16>
    %c0_47 = arith.constant 0 : index
    %c16 = arith.constant 16 : index
    %105 = vector.load %arg15[%c0_47, %c16] : memref<8x32xbf16, #tpu.memory_space<vmem>>, vector<8x8xbf16>
    tpu.vector_store %arg15[%c0_47, %c16], %104 {strides = array<i32>} : memref<8x32xbf16, #tpu.memory_space<vmem>>, vector<8x8xbf16>,
    %106 = vector.extract_strided_slice %9 {offsets = [0, 24], sizes = [8, 8], strides = [1, 1]} : vector<8x32xf32> to vector<8x8xf32>
    %107 = arith.truncf %106 : vector<8x8xf32> to vector<8x8xbf16>
    %cst_48 = arith.constant 0xFF800000 : f32
    %108 = vector.broadcast %cst_48 : f32 to vector<8x1xf32>
    %cst_49 = arith.constant 0.000000e+00 : f32
    %109 = vector.broadcast %cst_49 : f32 to vector<8x1xf32>
    %cst_50 = arith.constant 0.000000e+00 : f32
    %110 = vector.broadcast %cst_50 : f32 to vector<8x8xf32>
    %c3 = arith.constant 3 : index
    %c0_51 = arith.constant 0 : index
    %c0_52 = arith.constant 0 : index
    %111 = vector.load %arg13[%c3, %c0_51, %c0_52] : memref<4x8x8xbf16, #tpu.memory_space<vmem>>, vector<1x8x8xbf16>
    %112 = vector.shape_cast %111 : vector<1x8x8xbf16> to vector<8x8xbf16>
    %c3_53 = arith.constant 3 : index
    %c0_54 = arith.constant 0 : index
    %c0_55 = arith.constant 0 : index
    %113 = vector.load %arg14[%c3_53, %c0_54, %c0_55] : memref<4x8x8xbf16, #tpu.memory_space<vmem>>, vector<1x8x8xbf16>
    %114 = vector.shape_cast %113 : vector<1x8x8xbf16> to vector<8x8xbf16>
    %cst_56 = arith.constant dense<0.000000e+00> : vector<8x8xf32>
    %115 = tpu.matmul %107, %112, %cst_56 {dimension_numbers = #tpu.dot_dimension_numbers<[1], [1], [0], [0], [0, 0, 1, 0], [], []>} : vector<8x8xbf16>, vector<8x8xbf16>, vector<8x8xf32> -> vector<8x8xf32>
    %cst_57 = arith.constant dense<0xFF800000> : vector<8xf32>
    %116 = vector.multi_reduction <maximumf>, %115, %cst_57 [1] : vector<8x8xf32> to vector<8xf32>
    %117 = vector.shape_cast %116 : vector<8xf32> to vector<8x1xf32>
    %118 = arith.maximumf %108, %117 : vector<8x1xf32>
    %119 = arith.subf %108, %118 : vector<8x1xf32>
    %120 = math.exp %119 : vector<8x1xf32>
    %121 = vector.broadcast %118 : vector<8x1xf32> to vector<8x8xf32>
    %122 = arith.subf %115, %121 : vector<8x8xf32>
    %123 = math.exp %122 : vector<8x8xf32>
    %124 = arith.mulf %120, %109 : vector<8x1xf32>
    %cst_58 = arith.constant dense<0.000000e+00> : vector<8xf32>
    %125 = vector.multi_reduction <add>, %123, %cst_58 [1] : vector<8x8xf32> to vector<8xf32>
    %126 = vector.shape_cast %125 : vector<8xf32> to vector<8x1xf32>
    %127 = arith.addf %124, %126 : vector<8x1xf32>
    %128 = vector.broadcast %120 : vector<8x1xf32> to vector<8x8xf32>
    %129 = arith.mulf %128, %110 : vector<8x8xf32>
    %130 = arith.truncf %123 : vector<8x8xf32> to vector<8x8xbf16>
    %cst_59 = arith.constant dense<0.000000e+00> : vector<8x8xf32>
    %131 = tpu.matmul %130, %114, %cst_59 {dimension_numbers = #tpu.dot_dimension_numbers<[1], [0], [0], [1], [0, 0, 1, 1], [], []>} : vector<8x8xbf16>, vector<8x8xbf16>, vector<8x8xf32> -> vector<8x8xf32>
    %132 = arith.addf %129, %131 : vector<8x8xf32>
    %133 = tpu.reciprocal %127 {approx = true} : vector<8x1xf32> -> vector<8x1xf32>
    %134 = vector.broadcast %133 : vector<8x1xf32> to vector<8x8xf32>
    %135 = arith.mulf %132, %134 : vector<8x8xf32>
    %136 = arith.truncf %135 : vector<8x8xf32> to vector<8x8xbf16>
    %c0_60 = arith.constant 0 : index
    %c24 = arith.constant 24 : index
    %137 = vector.load %arg15[%c0_60, %c24] : memref<8x32xbf16, #tpu.memory_space<vmem>>, vector<8x8xbf16>
    tpu.vector_store %arg15[%c0_60, %c24], %136 {strides = array<i32>} : memref<8x32xbf16, #tpu.memory_space<vmem>>, vector<8x8xbf16>,
    %c0_61 = arith.constant 0 : index
    %c0_62 = arith.constant 0 : index
    %138 = vector.load %arg15[%c0_61, %c0_62] : memref<8x32xbf16, #tpu.memory_space<vmem>>, vector<8x32xbf16>
    %c0_63 = arith.constant 0 : index
    %c0_64 = arith.constant 0 : index
    %139 = vector.load %arg7[%c0_63, %c0_64] : memref<32x32xbf16, #tpu.memory_space<vmem>>, vector<32x32xbf16>
    %cst_65 = arith.constant dense<0.000000e+00> : vector<8x32xf32>
    %140 = tpu.matmul %138, %139, %cst_65 {dimension_numbers = #tpu.dot_dimension_numbers<[1], [0], [0], [1], [0, 0, 1, 1], [], []>} : vector<8x32xbf16>, vector<32x32xbf16>, vector<8x32xf32> -> vector<8x32xf32>
    %c0_66 = arith.constant 0 : index
    %c0_67 = arith.constant 0 : index
    %141 = vector.load %arg11[%c0_66, %c0_67] : memref<1x32xf32, #tpu.memory_space<vmem>>, vector<1x32xf32>
    %142 = vector.broadcast %141 : vector<1x32xf32> to vector<8x32xf32>
    %143 = arith.addf %140, %142 : vector<8x32xf32>
    %c0_68 = arith.constant 0 : index
    %c0_69 = arith.constant 0 : index
    %c0_70 = arith.constant 0 : index
    %144 = vector.load %arg12[%c0_68, %c0_69, %c0_70] : memref<1x8x32xf32, #tpu.memory_space<vmem>>, vector<1x8x32xf32>
    %145 = vector.shape_cast %144 : vector<1x8x32xf32> to vector<8x32xf32>
    %146 = vector.shape_cast %143 : vector<8x32xf32> to vector<1x8x32xf32>
    tpu.vector_store %arg12[%c0_68, %c0_69, %c0_70], %146 {strides = array<i32>} : memref<1x8x32xf32, #tpu.memory_space<vmem>>, vector<1x8x32xf32>,
    return
  }
  func.func @transform_0(%arg0: i32, %arg1: i32) -> (i32, i32, i32) {
    %c0_i32 = arith.constant 0 : i32
    %c0_i32_0 = arith.constant 0 : i32
    return %arg0, %arg1, %c0_i32 : i32, i32, i32
  }
  func.func @transform_1(%arg0: i32, %arg1: i32) -> (i32, i32, i32) {
    %c0_i32 = arith.constant 0 : i32
    %c0_i32_0 = arith.constant 0 : i32
    %c0_i32_1 = arith.constant 0 : i32
    return %arg0, %c0_i32, %c0_i32_0 : i32, i32, i32
  }
  func.func @transform_2(%arg0: i32, %arg1: i32) -> (i32, i32) {
    %c0_i32 = arith.constant 0 : i32
    %c0_i32_0 = arith.constant 0 : i32
    %c0_i32_1 = arith.constant 0 : i32
    return %c0_i32, %c0_i32_0 : i32, i32
  }
  func.func @transform_3(%arg0: i32, %arg1: i32) -> (i32, i32, i32) {
    %c0_i32 = arith.constant 0 : i32
    %c0_i32_0 = arith.constant 0 : i32
    %c0_i32_1 = arith.constant 0 : i32
    %c0_i32_2 = arith.constant 0 : i32
    return %c0_i32, %c0_i32_0, %c0_i32_1 : i32, i32, i32
  }
  func.func @transform_4(%arg0: i32, %arg1: i32) -> (i32, i32, i32) {
    %c0_i32 = arith.constant 0 : i32
    %c0_i32_0 = arith.constant 0 : i32
    %c0_i32_1 = arith.constant 0 : i32
    %c0_i32_2 = arith.constant 0 : i32
    return %c0_i32, %c0_i32_0, %c0_i32_1 : i32, i32, i32
  }
  func.func @transform_5(%arg0: i32, %arg1: i32) -> (i32, i32) {
    %c0_i32 = arith.constant 0 : i32
    %c0_i32_0 = arith.constant 0 : i32
    %c0_i32_1 = arith.constant 0 : i32
    return %c0_i32, %c0_i32_0 : i32, i32
  }
  func.func @transform_6(%arg0: i32, %arg1: i32) -> (i32, i32) {
    %c0_i32 = arith.constant 0 : i32
    %c0_i32_0 = arith.constant 0 : i32
    %c0_i32_1 = arith.constant 0 : i32
    return %c0_i32, %c0_i32_0 : i32, i32
  }
  func.func @transform_7(%arg0: i32, %arg1: i32) -> (i32, i32, i32) {
    %c0_i32 = arith.constant 0 : i32
    %c0_i32_0 = arith.constant 0 : i32
    %c0_i32_1 = arith.constant 0 : i32
    %c0_i32_2 = arith.constant 0 : i32
    return %c0_i32, %c0_i32_0, %c0_i32_1 : i32, i32, i32
  }
  func.func @transform_8(%arg0: i32, %arg1: i32) -> (i32, i32, i32) {
    %c0_i32 = arith.constant 0 : i32
    %c0_i32_0 = arith.constant 0 : i32
    %c0_i32_1 = arith.constant 0 : i32
    %c0_i32_2 = arith.constant 0 : i32
    return %c0_i32, %c0_i32_0, %c0_i32_1 : i32, i32, i32
  }
  func.func @transform_9(%arg0: i32, %arg1: i32) -> (i32, i32) {
    %c0_i32 = arith.constant 0 : i32
    %c0_i32_0 = arith.constant 0 : i32
    %c0_i32_1 = arith.constant 0 : i32
    return %c0_i32, %c0_i32_0 : i32, i32
  }
  func.func @transform_10(%arg0: i32, %arg1: i32) -> (i32, i32, i32) {
    %c0_i32 = arith.constant 0 : i32
    %c0_i32_0 = arith.constant 0 : i32
    return %arg0, %arg1, %c0_i32 : i32, i32, i32
  }
}

</mosaic_0001>

<bundles_post_ra>
// kernel: tpu_custom_call.1
= control target key start
LH: loop header
LB: loop body
LE: loop exit
PB: predicated region body
PF: predicated region fallthrough
CT: control target
= control target key end

     0   :  { %s2525_s0 = inlined_call_operand.vmem [shape: bf16[2,8,32], index: 0, kind: input, shape index: {}]   ;;  %s2526_s1 = inlined_call_operand.vmem [shape: bf16[2,8,32], index: 1, kind: input, shape index: {}]   ;;  %s2527_s2 = inlined_call_operand.vmem [shape: bf16[32,32], index: 2, kind: input, shape index: {}]   ;;  %s2528_s3 = inlined_call_operand.vmem [shape: bf16[4,32,8], index: 3, kind: input, shape index: {}]   ;;  %s2529_s4 = inlined_call_operand.vmem [shape: bf16[4,32,8], index: 4, kind: input, shape index: {}]   ;;  %s2530_s5 = inlined_call_operand.vmem [shape: bf16[32,32], index: 5, kind: input, shape index: {}]   ;;  %s2531_s6 = inlined_call_operand.vmem [shape: f32[1,32], index: 6, kind: input, shape index: {}]   ;;  %s2532_s7 = inlined_call_operand.vmem [shape: f32[4,1,8], index: 7, kind: input, shape index: {}]   ;;  %s2533_s8 = inlined_call_operand.vmem [shape: f32[4,1,8], index: 8, kind: input, shape index: {}]   ;;  %s2534_s9 = inlined_call_operand.vmem [shape: f32[1,32], index: 9, kind: input, shape index: {}]   ;;  %s2535_s10 = inlined_call_operand.hbm [shape: f32[2,8,32], index: 10, kind: output, shape index: {}]  }
   0x1   :  { %2536 = sst [smem:[#allocation8_spill]] %s2525_s0 }
   0x2   :  { %15 = vsyncpa [#allocation6], 0 }
   0x3   :  { %17 = vsyncpa [#allocation6 + $0x1], 0  ;;  %s2196_s13 = smov 0   ;;  %s2198_s14 = smov 0  }
   0x4   :  { %s2200_s15 = smov 0   ;;  %s2202_s16 = smov 0  }
   0x5   :  { %s2204_s17 = smov 0   ;;  %s2206_s18 = smov 0  }
   0x6 LB: > { %s1677_s19 = sadd.s32 4294967295, %s2130_s18   ;;  %s1678_s20 = sadd.s32 4294967294, %s2130_s18   ;;  %s2130_s18 = sphi %s2206_s18, %s23_s18   ;;  %s2126_s17 = sphi %s2204_s17, %s2544_s17   ;;  %s2122_s16 = sphi %s2202_s16, %s2543_s16   ;;  %s2118_s15 = sphi %s2200_s15, %s2542_s15   ;;  %s2114_s14 = sphi %s2198_s14, %s2541_s14   ;;  %s2110_s13 = sphi %s2196_s13, %s2540_s13  }
   0x7   : > { %s35_s21 = sadd.s32 1, %s2126_s17  ;;  %s266_s22 = sadd.s32 1, %s2118_s15 }
   0x8   : > { %p37_p0 = scmp.ge.s32.totalorder %s35_s21, 2  ;;  %p276_p1 = scmp.ne.s32.totalorder %s2118_s15, %s2114_s14 }
   0x9   : > { %p277_p2 = scmp.eq.s32.totalorder %s1677_s19, 1  ;;  %p282_p3 = scmp.ne.s32.totalorder %s2114_s14, %s2110_s13 }
   0xa   : > { %s2546_s21 = smov (%p37_p0, %s35_s21), 0  ;;  %p283_p5 = scmp.eq.s32.totalorder %s1678_s20, 1 }
   0xb   : > { %p2236_p4 = por %p277_p2, %p276_p1  ;;  %s261_s24 = ssub.s32 %s2126_s17, %s2546_s21 }
   0xc   : > { %p1681_p6 = scmp.ge.s32.totalorder %s2130_s18, 1  ;;  %p264_p7 = scmp.eq.s32.totalorder %s261_s24, 0 }
   0xd   : > { %p2243_p8 = por %p283_p5, %p282_p3  ;;  %p342_p9 = scmp.lt.s32.totalorder %s2130_s18, 3 }
   0xe   : > { %s2249_s26 = scalar_select %p264_p7, %s2118_s15, %s266_s22  }
   0xf   : > { %p343_p10 = pnand %p1681_p6, %p342_p9 }
  0x10   : > { %p386_p11 = scmp.lt.s32.totalorder (!%p343_p10), %s2122_s16, 1  ;;  %s2539_s0 = sld [smem:[#allocation8_spill]] (!%p343_p10) }
  0x11   : > { %346 = sbr.rel (%p343_p10) target bundleno = 1274 (0x4fa), region = 60  ;;  %s2135_s28 = smov (!%p343_p10), 104  }
  0x12   : > { %s2136_s19 = smov (!%p343_p10), 112   ;;  %s2139_s22 = smov (!%p343_p10), 24  }
  0x13   : > { %s1767_s29 = sshll.u32 (!%p343_p10), %s2122_s16, 7 }
  0x16   : > { %v2010_v0 = vld [vmem:[%s2528_s3 + $0x8] sm:$0xff]   ;;  %v2132_v1 = vmov 0.0   ;;  %v2011_v2 = vld [vmem:[%s2528_s3] sm:$0xff]   ;;  %vm2133_vm0 = vmmov 0   ;;  %s2266_s11 = scalar_select %p386_p11, %s2122_s16, 1  ;;  %vm426_vm1 = vcmask 261120  }
  0x17   : > { %1819 = vmatprep.subr.bf16.mxu0 %v2132_v1  ;;  %1827 = vmatprep.subr.bf16.mxu1 %v2132_v1  ;;  %v2012_v3 = vld [vmem:[%s2528_s3 + $0x18] sm:$0xff]   ;;  %v2013_v5 = vld [vmem:[%s2528_s3 + $0x10] sm:$0xff]   ;;  %v2020_v6 = vld [vmem:[%s2529_s4 + $0x8] sm:$0xff]   ;;  %vm534_vm2 = vcmask 60416   ;;  %vm1017_vm3 = vcmask 64512   ;;  %vm1082_vm4 = vcmask 1043456  }
  0x18   : > { %1820 = vmatpush3.bf16.msra.mxu0 %v2010_v0  ;;  %1823 = vmatprep.mubr.msk.bf16.mxu0 %vm2133_vm0, %v2132_v1  ;;  %s1683_s12 = sshll.u32 %s2266_s11, 2  ;;  %v2021_v7 = vld [vmem:[%s2529_s4] sm:$0xff]   ;;  %v2014_v8 = vld [vmem:[%s2528_s3 + $0x28] sm:$0xff]   ;;  %v2022_v10 = vld [vmem:[%s2529_s4 + $0x18] sm:$0xff]   ;;  %s2138_s11 = smov 16   ;;  %vm1256_vm5 = vcmask 126016  }
  0x19   : > { %1821 = vmatprep.subr.bf16.mxu0 %v2132_v1  ;;  %1831 = vmatprep.mubr.msk.bf16.mxu1 %vm2133_vm0, %v2132_v1  ;;  %s396_s27 = scalar_lea.vmem %s2526_s1, %s1683_s12  ;;  %v2015_v9 = vld [vmem:[%s2528_s3 + $0x20] sm:$0xff]   ;;  %v2023_v11 = vld [vmem:[%s2529_s4 + $0x10] sm:$0xff]   ;;  %v2016_v12 = vld [vmem:[%s2528_s3 + $0x38] sm:$0xff]   ;;  %s392_s30 = scalar_lea.vmem %s2539_s0, %s1683_s12  ;;  %vm1381_vm6 = vcmask 191616   ;;  %vm1506_vm7 = vcmask 257216  }
  0x1a   : > { %v2278_v4 = vld [vmem:[%s396_s27] sm:$0xf]  ;;  %1828 = vmatpush3.bf16.msra.mxu1 %v2020_v6  ;;  %v2024_v13 = vld [vmem:[%s2529_s4 + $0x28] sm:$0xff]   ;;  %v2017_v14 = vld [vmem:[%s2528_s3 + $0x30] sm:$0xff]   ;;  %s2134_s27 = smov 120   ;;  %s383_s12 = sand.u32 1, %s2114_s14  }
  0x1b   : > { %1829 = vmatprep.subr.bf16.mxu1 %v2132_v1  ;;  %v2018_v15 = vld [vmem:[%s2527_s2 + $0x8] sm:$0xff]   ;;  %v2019_v16 = vld [vmem:[%s2527_s2] sm:$0xff]   ;;  %v2026_v19 = vld [vmem:[%s2529_s4 + $0x38] sm:$0xff]   ;;  %s1682_s24 = sshll.u32 %s383_s12, 3 }
  0x1c   : > { %1822 = vmatpush3.bf16.msra.mxu0 %v2011_v2  ;;  %v946_v17 = vld [vmem:[%s392_s30] sm:$0xf]  ;;  %v2027_v20 = vld [vmem:[%s2529_s4 + $0x30] sm:$0xff]   ;;  %s385_s30 = scalar_lea.vmem [#allocation5], %s1682_s24  ;;  %s2140_s24 = smov [#allocation5]  }
  0x1d   : > { %1835 = vmatprep.subr.bf16.mxu0 %v2132_v1  ;;  %v2025_v18 = vld [vmem:[%s2529_s4 + $0x20] sm:$0xff]  }
  0x1e   : > { %1830 = vmatpush3.bf16.msra.mxu1 %v2021_v7  ;;  %v1685_v21 = vld [vmem:[%s2532_s7] ss:$0 sm:$0xff]  ;;  %v1698_v28 = vld [vmem:[%s2532_s7 + $0x1] ss:$0 sm:$0xff]  ;;  %v1716_v37 = vld [vmem:[%s2532_s7 + $0x2] ss:$0 sm:$0xff] }
  0x1f   : > { %1824 = vmatmul.mubr.msk.bf16.vlgmr.msra.gmra.mxu0 %vm426_vm1, %v2278_v4  ;;  %1843 = vmatprep.subr.bf16.mxu1 %v2132_v1  ;;  %v1734_v44 = vld [vmem:[%s2532_s7 + $0x3] ss:$0 sm:$0xff]  ;;  %v1747_v51 = vld [vmem:[%s2531_s6] ss:$0 sm:$0xff] }
  0x20   : > { %1836 = vmatpush3.bf16.msra.mxu0 %v2012_v3  ;;  %1839 = vmatprep.mubr.msk.bf16.mxu0 %vm2133_vm0, %v2132_v1  ;;  %v1689_v60 = vld [vmem:[%s2533_s8] ss:$0 sm:$0xff] }
  0x21   : > { %1837 = vmatprep.subr.bf16.mxu0 %v2132_v1  ;;  %1832 = vmatmul.mubr.msk.bf16.vlgmr.msra.gmra.mxu1 %vm426_vm1, %v2278_v4 }
  0x22   : > { %1844 = vmatpush3.bf16.msra.mxu1 %v2022_v10  ;;  %1847 = vmatprep.mubr.msk.bf16.mxu1 %vm2133_vm0, %v2132_v1 }
  0x23   : > { %1845 = vmatprep.subr.bf16.mxu1 %v2132_v1 }
  0x24   : > { %1838 = vmatpush3.bf16.msra.mxu0 %v2013_v5 }
  0x25   : > { %1851 = vmatprep.subr.bf16.mxu0 %v2132_v1 }
  0x26   : > { %1846 = vmatpush3.bf16.msra.mxu1 %v2023_v11  ;;  %v1725_v11 = vld [vmem:[%s2533_s8 + $0x2] ss:$0 sm:$0xff] }
  0x27   : > { %1840 = vmatmul.mubr.msk.bf16.vlgmr.msra.gmra.mxu0 %vm426_vm1, %v2278_v4  ;;  %1859 = vmatprep.subr.bf16.mxu1 %v2132_v1 }
  0x28   : > { %1852 = vmatpush3.bf16.msra.mxu0 %v2014_v8  ;;  %1855 = vmatprep.mubr.msk.bf16.mxu0 %vm2133_vm0, %v2132_v1 }
  0x29   : > { %1853 = vmatprep.subr.bf16.mxu0 %v2132_v1  ;;  %1848 = vmatmul.mubr.msk.bf16.vlgmr.msra.gmra.mxu1 %vm426_vm1, %v2278_v4 }
  0x2a   : > { %1860 = vmatpush3.bf16.msra.mxu1 %v2024_v13  ;;  %1863 = vmatprep.mubr.msk.bf16.mxu1 %vm2133_vm0, %v2132_v1 }
  0x2b   : > { %1861 = vmatprep.subr.bf16.mxu1 %v2132_v1 }
  0x2c   : > { %1854 = vmatpush3.bf16.msra.mxu0 %v2015_v9 }
  0x2d   : > { %1867 = vmatprep.subr.bf16.mxu0 %v2132_v1 }
  0x2e   : > { %1862 = vmatpush3.bf16.msra.mxu1 %v2025_v18  ;;  %v1743_v18 = vld [vmem:[%s2533_s8 + $0x3] ss:$0 sm:$0xff] }
  0x2f   : > { %1856 = vmatmul.mubr.msk.bf16.vlgmr.msra.gmra.mxu0 %vm426_vm1, %v2278_v4  ;;  %1875 = vmatprep.subr.bf16.mxu1 %v2132_v1 }
  0x30   : > { %1868 = vmatpush3.bf16.msra.mxu0 %v2016_v12  ;;  %1871 = vmatprep.mubr.msk.bf16.mxu0 %vm2133_vm0, %v2132_v1 }
  0x31   : > { %1869 = vmatprep.subr.bf16.mxu0 %v2132_v1  ;;  %1864 = vmatmul.mubr.msk.bf16.vlgmr.msra.gmra.mxu1 %vm426_vm1, %v2278_v4 }
  0x32   : > { %1876 = vmatpush3.bf16.msra.mxu1 %v2026_v19  ;;  %1879 = vmatprep.mubr.msk.bf16.mxu1 %vm2133_vm0, %v2132_v1 }
  0x33   : > { %1877 = vmatprep.subr.bf16.mxu1 %v2132_v1 }
  0x34   : > { %1870 = vmatpush3.bf16.msra.mxu0 %v2017_v14 }
  0x35   : > { %1883 = vmatprep.subr.bf16.mxu0 %v2132_v1 }
  0x36   : > { %1878 = vmatpush3.bf16.msra.mxu1 %v2027_v20 }
  0x37   : > { %1872 = vmatmul.mubr.msk.bf16.vlgmr.msra.gmra.mxu0 %vm426_vm1, %v2278_v4  ;;  %1891 = vmatprep.subr.bf16.mxu1 %v2132_v1 }
  0x38   : > { %1884 = vmatpush3.bf16.msra.mxu0 %v2018_v15  ;;  %1887 = vmatprep.mubr.msk.bf16.mxu0 %vm2133_vm0, %v2132_v1 }
  0x39   : > { %1885 = vmatprep.subr.bf16.mxu0 %v2132_v1  ;;  %1880 = vmatmul.mubr.msk.bf16.vlgmr.msra.gmra.mxu1 %vm426_vm1, %v2278_v4  ;;  %v1707_v4 = vld [vmem:[%s2533_s8 + $0x1] ss:$0 sm:$0xff] }
  0x3a   : > { %1893 = vmatprep.mubr.msk.bf16.mxu1 %vm2133_vm0, %v2132_v1 }
  0x3c   : > { %1886 = vmatpush3.bf16.msra.mxu0 %v2019_v16 }
  0x3d   : > { %1897 = vmatprep.subr.bf16.mxu0 %v2132_v1 }
  0x3f   : > { %1888 = vmatmul.mubr.msk.bf16.vlgmr.msra.gmra.mxu0 %vm426_vm1, %v946_v17 }
  0x40   : > { %1899 = vmatprep.mubr.msk.bf16.mxu0 %vm2133_vm0, %v2132_v1 }
  0xdf   : > { %v464_v22 = vpop.f32.mrf.mxu0 }
  0xe0   : > { %v465_v23 = vadd.f32 %v1685_v21, %v464_v22 }
  0xe1   : > { %v1825_v24 = vpop.f32.mrf.mxu0  ;;  %v527_v61 = vpop.f32.mrf.mxu1 }
  0xe2   : > { %v533_v25 = vpack.c.bf16 %v465_v23, %v465_v23  ;;  %v528_v62 = vadd.f32 %v1689_v60, %v527_v61 }
  0xe3   : > { %v467_v26 = vpop.f32.mrf.mxu0  ;;  %v1833_v63 = vpop.f32.mrf.mxu1 }
  0xe4   : > { %535 = vst.msk [vmem:[#allocation2] sm:$0xf] %vm534_vm2, %v533_v25  ;;  %v536_v0 = vpack.c.bf16 %v528_v62, %v528_v62 }
  0xe5   : > { %v1826_v27 = vpop.f32.mrf.mxu0  ;;  %v530_v2 = vpop.f32.mrf.mxu1 }
  0xe6   : > { %537 = vst.msk [vmem:[#allocation3] sm:$0xf] %vm534_vm2, %v536_v0 }
  0xe7   : > { %v597_v29 = vpop.f32.mrf.mxu0  ;;  %v1834_v3 = vpop.f32.mrf.mxu1 }
  0xe8   : > { %v598_v30 = vadd.f32 %v1698_v28, %v597_v29 }
  0xe9   : > { %v1841_v31 = vpop.f32.mrf.mxu0  ;;  %v662_v5 = vpop.f32.mrf.mxu1 }
  0xea   : > { %v668_v32 = vpack.c.bf16 %v598_v30, %v598_v30  ;;  %v663_v6 = vadd.f32 %v1707_v4, %v662_v5 }
  0xeb   : > { %v600_v33 = vpop.f32.mrf.mxu0  ;;  %v1015_v34 = vld [vmem:[#allocation2] sm:$0xf]  ;;  %v1849_v7 = vpop.f32.mrf.mxu1 }
  0xec   : > { %670 = vst.msk [vmem:[#allocation2 + $0x4] sm:$0xf] %vm534_vm2, %v668_v32  ;;  %v1022_v35 = vsel %vm1017_vm3, %v1015_v34, 0  ;;  %v671_v8 = vpack.c.bf16 %v663_v6, %v663_v6 }
  0xed   : > { %v1842_v36 = vpop.f32.mrf.mxu0  ;;  %1892 = vmatpush3.bf16.xpose.msra.mxu1 %v1022_v35  ;;  %v665_v9 = vpop.f32.mrf.mxu1  ;;  %v1016_v25 = vld [vmem:[#allocation3] sm:$0xf] }
  0xee   : > { %1903 = vmatprep.subr.bf16.mxu1 %v2132_v1  ;;  %673 = vst.msk [vmem:[#allocation3 + $0x4] sm:$0xf] %vm534_vm2, %v671_v8  ;;  %v1084_v26 = vsel %vm1082_vm4, %v1016_v25, 0 }
  0xef   : > { %v733_v38 = vpop.f32.mrf.mxu0  ;;  %v1850_v10 = vpop.f32.mrf.mxu1  ;;  %1898 = vmatpush3.bf16.msra.mxu0 %v1084_v26 }
  0xf0   : > { %v734_v39 = vadd.f32 %v1716_v37, %v733_v38  ;;  %1909 = vmatprep.subr.bf16.mxu0 %v2132_v1 }
  0xf1   : > { %v1857_v40 = vpop.f32.mrf.mxu0  ;;  %v798_v12 = vpop.f32.mrf.mxu1 }
  0xf2   : > { %v804_v41 = vpack.c.bf16 %v734_v39, %v734_v39  ;;  %v799_v13 = vadd.f32 %v1725_v11, %v798_v12 }
  0xf3   : > { %v736_v42 = vpop.f32.mrf.mxu0  ;;  %v1133_v55 = vld [vmem:[#allocation2 + $0x4] sm:$0xf]  ;;  %v1865_v14 = vpop.f32.mrf.mxu1 }
  0xf4   : > { %806 = vst.msk [vmem:[#allocation2 + $0x8] sm:$0xf] %vm534_vm2, %v804_v41  ;;  %v1143_v58 = vsel %vm1017_vm3, %v1133_v55, 0  ;;  %v807_v15 = vpack.c.bf16 %v799_v13, %v799_v13 }
  0xf5   : > { %v1858_v43 = vpop.f32.mrf.mxu0  ;;  %v801_v16 = vpop.f32.mrf.mxu1 }
  0xf6   : > { %809 = vst.msk [vmem:[#allocation3 + $0x8] sm:$0xf] %vm534_vm2, %v807_v15 }
  0xf7   : > { %v869_v45 = vpop.f32.mrf.mxu0  ;;  %v1866_v17 = vpop.f32.mrf.mxu1 }
  0xf8   : > { %v870_v46 = vadd.f32 %v1734_v44, %v869_v45 }
  0xf9   : > { %v1873_v47 = vpop.f32.mrf.mxu0  ;;  %v934_v19 = vpop.f32.mrf.mxu1 }
  0xfa   : > { %v940_v48 = vpack.c.bf16 %v870_v46, %v870_v46  ;;  %v935_v20 = vadd.f32 %v1743_v18, %v934_v19 }
  0xfb   : > { %v872_v49 = vpop.f32.mrf.mxu0  ;;  %v1881_v21 = vpop.f32.mrf.mxu1  ;;  %v1259_v27 = vld [vmem:[#allocation2 + $0x8] sm:$0xf] }
  0xfc   : > { %942 = vst.msk [vmem:[#allocation2 + $0xc] sm:$0xf] %vm534_vm2, %v940_v48  ;;  %v943_v22 = vpack.c.bf16 %v935_v20, %v935_v20  ;;  %v1268_v29 = vsel %vm1017_vm3, %v1259_v27, 0 }
  0xfd   : > { %v1874_v50 = vpop.f32.mrf.mxu0  ;;  %v937_v23 = vpop.f32.mrf.mxu1  ;;  %v1261_v8 = vld [vmem:[#allocation3 + $0x8] sm:$0xf] }
  0xfe   : > { %945 = vst.msk [vmem:[#allocation3 + $0xc] sm:$0xf] %vm534_vm2, %v943_v22  ;;  %v1329_v11 = vsel %vm1082_vm4, %v1261_v8, 0 }
  0xff   : > { %v1008_v52 = vpop.f32.mrf.mxu0  ;;  %v1882_v24 = vpop.f32.mrf.mxu1 }
 0x100   : > { %v1009_v53 = vadd.f32 %v1747_v51, %v1008_v52 }
 0x101   : > { %v1889_v54 = vpop.f32.mrf.mxu0 }
 0x102   : > { %v1014_v56 = vpack.c.bf16 %v1009_v53, %v1009_v53 }
 0x103   : > { %v1011_v57 = vpop.f32.mrf.mxu0  ;;  %v1384_v30 = vld [vmem:[#allocation2 + $0xc] sm:$0xf] }
 0x104   : > { %1137 = vrot.lane.b32.xlu0 %v1014_v56, %s2134_s27  ;;  %1894 = vmatmul.mubr.msk.bf16.vlgmr.msra.gmra.mxu1 %vm1017_vm3, %v1014_v56  ;;  %v1393_v32 = vsel %vm1017_vm3, %v1384_v30, 0  ;;  %s1577_s27 = scalar_lea.sflag [#allocation6], %s383_s12 }
 0x105   : > { %1904 = vmatpush3.bf16.xpose.msra.mxu1 %v1143_v58  ;;  %1387 = vrot.lane.b32.xlu1 %v1014_v56, %s2135_s28  ;;  %v1890_v59 = vpop.f32.mrf.mxu0  ;;  %v1135_v58 = vld [vmem:[#allocation3 + $0x4] sm:$0xf]  ;;  %v1386_v13 = vld [vmem:[#allocation3 + $0xc] sm:$0xf]  ;;  %s2137_s28 = smov 8  }
 0x106   : > { %1905 = vmatprep.mubr.msk.bf16.mxu1 %vm2133_vm0, %v2132_v1  ;;  %1915 = vmatprep.subr.bf16.mxu1 %v2132_v1  ;;  %v1204_v60 = vsel %vm1082_vm4, %v1135_v58, 0  ;;  %v1454_v16 = vsel %vm1082_vm4, %v1386_v13, 0 }
 0x108   : > { %1262 = vrot.lane.b32.xlu0 %v1014_v56, %s2136_s19  ;;  %s1591_s19 = sshll.u32 %s385_s30, 4  ;;  %s2480_s19 = int_to_ptr.vmem [resolvable:$true] %s1591_s19 }
 0x109   : > { %s2054_s16 = scalar_lea.vmem %s2480_s19, 128 }
 0x10a   : > { %p2055_p12 = scmp.ne.s32.totalorder %s2480_s19, %s2054_s16 }
 0x10c   : > { %p2056_p13 = pnand %p2055_p12, %p2236_p4 }
 0x10e   : > { %p2057_p0 = pneg %p2056_p13 }
 0x176   : > { %v1138_v28 = vpop.permute.xlu0 %1137 }
 0x177   : > { %1906 = vmatmul.mubr.msk.bf16.vlgmr.msra.gmra.mxu1 %vm1017_vm3, %v1138_v28  ;;  %v1388_v33 = vpop.permute.xlu1 %1387 }
 0x178   : > { %1916 = vmatpush3.bf16.xpose.msra.mxu1 %v1268_v29  ;;  %1917 = vmatprep.mubr.msk.bf16.mxu1 %vm2133_vm0, %v2132_v1 }
 0x179   : > { %1927 = vmatprep.subr.bf16.mxu1 %v2132_v1 }
 0x17a   : > { %v1263_v31 = vpop.permute.xlu0 %1262 }
 0x17f   : > { %1918 = vmatmul.mubr.msk.bf16.vlgmr.msra.gmra.mxu1 %vm1017_vm3, %v1263_v31 }
 0x180   : > { %1928 = vmatpush3.bf16.xpose.msra.mxu1 %v1393_v32  ;;  %1929 = vmatprep.mubr.msk.bf16.mxu1 %vm2133_vm0, %v2132_v1 }
 0x181   : > { %1939 = vmatprep.subr.bf16.mxu1 %v2132_v1 }
 0x187   : > { %1930 = vmatmul.mubr.msk.bf16.vlgmr.msra.gmra.mxu1 %vm1017_vm3, %v1388_v33 }
 0x188   : > { %1943 = vmatprep.mubr.msk.bf16.mxu1 %vm2133_vm0, %v2132_v1 }
 0x1c4   : > { %v1058_v34 = vpop.f32.mrf.mxu1 }
 0x1c5   : > { %v1064_v35 = vsel %vm1017_vm3, %v1058_v34, -inf }
 0x1c6   : > { %1065 = vmax.xlane.f32.xlu1 %v1064_v35  ;;  %v1895_v36 = vpop.f32.mrf.mxu1 }
 0x1c8   : > { %v1061_v37 = vpop.f32.mrf.mxu1 }
 0x1ca   : > { %v1896_v38 = vpop.f32.mrf.mxu1 }
 0x237   : > { %v1179_v39 = vpop.f32.mrf.mxu1 }
 0x238   : > { %v1185_v40 = vsel %vm1017_vm3, %v1179_v39, -inf }
 0x239   : > { %1186 = vmax.xlane.f32.xlu0 %v1185_v40  ;;  %v1907_v41 = vpop.f32.mrf.mxu1 }
 0x23b   : > { %v1182_v42 = vpop.f32.mrf.mxu1 }
 0x23d   : > { %v1908_v43 = vpop.f32.mrf.mxu1 }
 0x23f   : > { %v1304_v44 = vpop.f32.mrf.mxu1 }
 0x240   : > { %v1310_v45 = vsel %vm1017_vm3, %v1304_v44, -inf }
 0x241   : > { %1311 = vmax.xlane.f32.xlu0 %v1310_v45  ;;  %v1919_v46 = vpop.f32.mrf.mxu1 }
 0x243   : > { %v1307_v47 = vpop.f32.mrf.mxu1 }
 0x245   : > { %v1920_v48 = vpop.f32.mrf.mxu1 }
 0x247   : > { %v1429_v49 = vpop.f32.mrf.mxu1 }
 0x248   : > { %v1435_v50 = vsel %vm1017_vm3, %v1429_v49, -inf }
 0x249   : > { %1436 = vmax.xlane.f32.xlu1 %v1435_v50  ;;  %v1931_v51 = vpop.f32.mrf.mxu1 }
 0x24b   : > { %v1432_v52 = vpop.f32.mrf.mxu1 }
 0x24d   : > { %v1932_v53 = vpop.f32.mrf.mxu1 }
 0x24f   : > { %v1066_v54 = vpop.xlane.xlu1 %1065 }
 0x250   : > { %v1070_v55 = vsub.f32 %v1058_v34, %v1066_v54  ;;  %v1067_v25 = vsub.f32 -inf, %v1066_v54 }
 0x252   : > { %v1071_v56 = vmul.f32 1.442695, %v1070_v55  ;;  %v1068_v26 = vmul.f32 1.442695, %v1067_v25 }
 0x254   : > { %2030 = vpow2.f32 %v1071_v56 }
 0x261   : > { %v2031_v57 = vpop.eup %2030 }
 0x262   : > { %v1078_v59 = vpack.c.bf16 %v2031_v57, %v2031_v57  ;;  %v1074_v17 = vsel %vm1017_vm3, %v2031_v57, 0.0 }
 0x264   : > { %1900 = vmatmul.mubr.msk.bf16.vlgmr.msra.gmra.mxu0 %vm1017_vm3, %v1078_v59 }
 0x265   : > { %1910 = vmatpush3.bf16.msra.mxu0 %v1204_v60  ;;  %1911 = vmatprep.mubr.msk.bf16.mxu0 %vm2133_vm0, %v2132_v1 }
 0x266   : > { %1921 = vmatprep.subr.bf16.mxu0 %v2132_v1 }
 0x2c2   : > { %v1187_v61 = vpop.xlane.xlu0 %1186 }
 0x2c3   : > { %v1191_v62 = vsub.f32 %v1179_v39, %v1187_v61  ;;  %v1188_v32 = vsub.f32 -inf, %v1187_v61 }
 0x2c5   : > { %v1192_v63 = vmul.f32 1.442695, %v1191_v62  ;;  %v1189_v33 = vmul.f32 1.442695, %v1188_v32 }
 0x2c7   : > { %2032 = vpow2.f32 %v1192_v63 }
 0x2ca   : > { %v1312_v0 = vpop.xlane.xlu0 %1311 }
 0x2cb   : > { %v1316_v2 = vsub.f32 %v1304_v44, %v1312_v0  ;;  %v1313_v34 = vsub.f32 -inf, %v1312_v0 }
 0x2cd   : > { %v1317_v3 = vmul.f32 1.442695, %v1316_v2  ;;  %v1314_v35 = vmul.f32 1.442695, %v1313_v34  ;;  %v2028_v2 = vld [vmem:[%s2530_s5 + $0x8] sm:$0xff]  }
 0x2ce   : > { %1940 = vmatpush3.bf16.msra.mxu1 %v2028_v2 }
 0x2cf   : > { %2034 = vpow2.f32 %v1317_v3  ;;  %1941 = vmatprep.subr.bf16.mxu1 %v2132_v1 }
 0x2d2   : > { %v1437_v4 = vpop.xlane.xlu1 %1436 }
 0x2d3   : > { %v1441_v5 = vsub.f32 %v1429_v49, %v1437_v4  ;;  %v1438_v39 = vsub.f32 -inf, %v1437_v4 }
 0x2d4   : > { %v2033_v6 = vpop.eup %2032 }
 0x2d5   : > { %v1442_v7 = vmul.f32 1.442695, %v1441_v5  ;;  %v1195_v9 = vsel %vm1017_vm3, %v2033_v6, 0.0  ;;  %v1199_v10 = vpack.c.bf16 %v2033_v6, %v2033_v6  ;;  %v1439_v41 = vmul.f32 1.442695, %v1438_v39  ;;  %v2029_v5 = vld [vmem:[%s2530_s5] sm:$0xff]  }
 0x2d6   : > { %1196 = vadd.xlane.f32.xlu0 %v1195_v9  ;;  %1942 = vmatpush3.bf16.msra.mxu1 %v2029_v5 }
 0x2d7   : > { %2036 = vpow2.f32 %v1442_v7  ;;  %1912 = vmatmul.mubr.msk.bf16.vlgmr.msra.gmra.mxu0 %vm1017_vm3, %v1199_v10 }
 0x2d8   : > { %1922 = vmatpush3.bf16.msra.mxu0 %v1329_v11  ;;  %1923 = vmatprep.mubr.msk.bf16.mxu0 %vm2133_vm0, %v2132_v1  ;;  %2038 = vpow2.f32 %v1068_v26 }
 0x2d9   : > { %1933 = vmatprep.subr.bf16.mxu0 %v2132_v1 }
 0x2dc   : > { %v2035_v12 = vpop.eup %2034 }
 0x2dd   : > { %v1320_v14 = vsel %vm1017_vm3, %v2035_v12, 0.0  ;;  %v1324_v15 = vpack.c.bf16 %v2035_v12, %v2035_v12 }
 0x2de   : > { %1321 = vadd.xlane.f32.xlu1 %v1320_v14 }
 0x2df   : > { %1924 = vmatmul.mubr.msk.bf16.vlgmr.msra.gmra.mxu0 %vm1017_vm3, %v1324_v15 }
 0x2e0   : > { %1934 = vmatpush3.bf16.msra.mxu0 %v1454_v16  ;;  %1935 = vmatprep.mubr.msk.bf16.mxu0 %vm2133_vm0, %v2132_v1 }
 0x2e2   : > { %1075 = vadd.xlane.f32.xlu1 %v1074_v17 }
 0x2e4   : > { %v2037_v18 = vpop.eup %2036 }
 0x2e5   : > { %v1445_v19 = vsel %vm1017_vm3, %v2037_v18, 0.0  ;;  %v1449_v20 = vpack.c.bf16 %v2037_v18, %v2037_v18  ;;  %v2039_v27 = vpop.eup %2038 }
 0x2e6   : > { %1446 = vadd.xlane.f32.xlu0 %v1445_v19  ;;  %v1073_v29 = vmul.f32 0.0, %v2039_v27  ;;  %v1762_v19 = vld [vmem:[%s2534_s9] ss:$0 sm:$0xff] }
 0x2e7   : > { %1936 = vmatmul.mubr.msk.bf16.vlgmr.msra.gmra.mxu0 %vm1017_vm3, %v1449_v20 }
 0x324   : > { %v1120_v21 = vpop.f32.mrf.mxu0 }
 0x325   : > { %v1126_v36 = vadd.f32 %v1120_v21, %v1073_v29 }
 0x326   : > { %v1901_v22 = vpop.f32.mrf.mxu0 }
 0x328   : > { %v1123_v23 = vpop.f32.mrf.mxu0 }
 0x32a   : > { %v1902_v24 = vpop.f32.mrf.mxu0 }
 0x35f   : > { %v1197_v43 = vpop.xlane.xlu0 %1196 }
 0x367   : > { %v1322_v28 = vpop.xlane.xlu1 %1321 }
 0x36b   : > { %v1076_v30 = vpop.xlane.xlu1 %1075 }
 0x36c   : > { %v1077_v31 = vadd.f32 %v1076_v30, %v1073_v29 }
 0x36e   : > { %2040 = vrcp.f32 %v1077_v31 }
 0x36f   : > { %2042 = vpow2.f32 %v1189_v33  ;;  %v1447_v50 = vpop.xlane.xlu0 %1446 }
 0x370   : > { %2044 = vpow2.f32 %v1314_v35 }
 0x371   : > { %2046 = vpow2.f32 %v1439_v41 }
 0x37b   : > { %v2041_v37 = vpop.eup %2040 }
 0x37c   : > { %v1128_v38 = vmul.f32 %v2041_v37, %v1126_v36  ;;  %v2043_v42 = vpop.eup %2042 }
 0x37d   : > { %v1194_v44 = vmul.f32 0.0, %v2043_v42  ;;  %v2045_v46 = vpop.eup %2044 }
 0x37e   : > { %v1129_v40 = vpack.c.bf16 %v1128_v38, %v1128_v38  ;;  %v1319_v47 = vmul.f32 0.0, %v2045_v46  ;;  %v2047_v49 = vpop.eup %2046 }
 0x37f   : > { %v1198_v45 = vadd.f32 %v1197_v43, %v1194_v44  ;;  %v1444_v51 = vmul.f32 0.0, %v2047_v49 }
 0x380   : > { %1131 = vst.msk [vmem:[#allocation4] sm:$0xf] %vm534_vm2, %v1129_v40  ;;  %v1323_v48 = vadd.f32 %v1322_v28, %v1319_v47 }
 0x381   : > { %2048 = vrcp.f32 %v1198_v45  ;;  %v1448_v53 = vadd.f32 %v1447_v50, %v1444_v51 }
 0x382   : > { %2050 = vrcp.f32 %v1323_v48 }
 0x383   : > { %2052 = vrcp.f32 %v1448_v53 }
 0x38e   : > { %v2049_v55 = vpop.eup %2048 }
 0x38f   : > { %v2051_v63 = vpop.eup %2050 }
 0x390   : > { %v2053_v10 = vpop.eup %2052 }
 0x397   : > { %v1240_v52 = vpop.f32.mrf.mxu0 }
 0x398   : > { %v1246_v54 = vadd.f32 %v1240_v52, %v1194_v44 }
 0x399   : > { %v1913_v56 = vpop.f32.mrf.mxu0 }
 0x39a   : > { %v1248_v57 = vmul.f32 %v2049_v55, %v1246_v54 }
 0x39b   : > { %v1243_v58 = vpop.f32.mrf.mxu0 }
 0x39c   : > { %v1770_v59 = vpack.c.bf16 %v1248_v57, %v1248_v57 }
 0x39d   : > { %v1914_v60 = vpop.f32.mrf.mxu0 }
 0x39e   : > { %1253 = vrot.lane.b32.xlu0 %v1770_v59, %s2137_s28  ;;  %s2058_s28 = sshll.u32 %s2140_s24, 4  ;;  %s2059_s28 = int_to_ptr.vmem [resolvable:$false] %s2058_s28 }
 0x39f   : > { %v1365_v61 = vpop.f32.mrf.mxu0  ;;  %p2061_p1 = scmp.lt.s32.totalorder %s2480_s19, %s2059_s28 }
 0x3a0   : > { %v1371_v62 = vadd.f32 %v1365_v61, %v1319_v47 }
 0x3a1   : > { %v1925_v0 = vpop.f32.mrf.mxu0 }
 0x3a2   : > { %v1373_v3 = vmul.f32 %v2051_v63, %v1371_v62 }
 0x3a3   : > { %v1368_v4 = vpop.f32.mrf.mxu0 }
 0x3a4   : > { %v1771_v6 = vpack.c.bf16 %v1373_v3, %v1373_v3 }
 0x3a5   : > { %v1926_v7 = vpop.f32.mrf.mxu0 }
 0x3a6   : > { %1378 = vrot.lane.b32.xlu1 %v1771_v6, %s2138_s11 }
 0x3a7   : > { %v1490_v8 = vpop.f32.mrf.mxu0 }
 0x3a8   : > { %v1496_v9 = vadd.f32 %v1490_v8, %v1444_v51 }
 0x3a9   : > { %v1937_v11 = vpop.f32.mrf.mxu0 }
 0x3aa   : > { %v1498_v12 = vmul.f32 %v2053_v10, %v1496_v9 }
 0x3ab   : > { %v1493_v13 = vpop.f32.mrf.mxu0 }
 0x3ac   : > { %v1772_v14 = vpack.c.bf16 %v1498_v12, %v1498_v12 }
 0x3ad   : > { %v1938_v15 = vpop.f32.mrf.mxu0 }
 0x3ae   : > { %1503 = vrot.lane.b32.xlu1 %v1772_v14, %s2139_s22  ;;  %s2478_s22 = scalar_lea.hbm %s2535_s10, %s1767_s29  ;;  %s2060_s29 = scalar_lea.vmem %s2059_s28, 256 }
 0x3af   : > { %p2062_p2 = scmp.lt.s32.totalorder %s2060_s29, %s2054_s16 }
 0x3b1   : > { %p2063_p3 = por %p2062_p2, %p2061_p1 }
 0x3b3   : > { %p2064_p5 = pnand %p2063_p3, %p2057_p0 }
 0x410   : > { %v1254_v16 = vpop.permute.xlu0 %1253 }
 0x411   : > { %1257 = vst.msk [vmem:[#allocation4] sm:$0xf] %vm1256_vm5, %v1254_v16 }
 0x418   : > { %v1379_v1 = vpop.permute.xlu1 %1378 }
 0x419   : > { %1382 = vst.msk [vmem:[#allocation4] sm:$0xf] %vm1381_vm6, %v1379_v1 }
 0x420   : > { %v1504_v17 = vpop.permute.xlu1 %1503 }
 0x421   : > { %1507 = vst.msk [vmem:[#allocation4] sm:$0xf] %vm1506_vm7, %v1504_v17 }
 0x428   : > { %v1508_v18 = vld [vmem:[#allocation4] sm:$0xf] }
 0x429   : > { %1944 = vmatmul.mubr.msk.bf16.vlgmr.msra.gmra.mxu1 %vm426_vm1, %v1508_v18 }
 0x4e9   : > { %v1569_v20 = vpop.f32.mrf.mxu1 }
 0x4ea   : > { %v1570_v21 = vadd.f32 %v1762_v19, %v1569_v20 }
 0x4eb   : > { %v1945_v22 = vpop.f32.mrf.mxu1 }
 0x4ec   : > { %1575 = vst.msk [vmem:[%s385_s30] sm:$0xff] %vm426_vm1, %v1570_v21 }
 0x4ed   : > { %v1572_v23 = vpop.f32.mrf.mxu1 }
 0x4ee   : > { %2067 = shalt.err (!%p2064_p5)
}
 0x4ef   : > { %s2068_s30 = scalar_lea.hbm %s2478_s22, 128  ;;  %s2072_s11 = scalar_lea.hbm %s2535_s10, 256 }
 0x4f0   : > { %p2069_p6 = scmp.ne.s32.totalorder %s2478_s22, %s2068_s30  ;;  %p2073_p10 = scmp.lt.s32.totalorder %s2478_s22, %s2535_s10 }
 0x4f1   : > { %p2074_p11 = scmp.lt.s32.totalorder %s2072_s11, %s2068_s30 }
 0x4f2   : > { %p2070_p7 = pnand %p2069_p6, %p2236_p4 }
 0x4f3   : > { %p2075_p12 = por %p2074_p11, %p2073_p10 }
 0x4f4   : > { %p2071_p9 = pneg %p2070_p7 }
 0x4f6   : > { %p2076_p13 = pnand %p2075_p12, %p2071_p9 }
 0x4f8   : > { %2079 = shalt.err (!%p2076_p13)
}
 0x4f9   : > { %1947 = dma.vmem_to_hbm [thread:$0]  (%p2236_p4), %s2480_s19, 128, %s2478_s22, %s1577_s27   ;;  %v1946_v24 = vpop.f32.mrf.mxu1 }
 0x4fa PF: > { %p1953_p0 = scmp.ge.s32.totalorder %s2130_s18, 2  ;;  %s1603_s16 = sand.u32 1, %s2110_s13  }
 0x4fb   : > { %s1604_s0 = scalar_lea.sflag [#allocation6], %s1603_s16 }
 0x4fc   : > { %p1950_p1 = pnand %p1953_p0, %p2243_p8 }
 0x4fe   : > { %p1951_p2 = pneg %p1950_p1 }
 0x500   : > { %2105 = dma.done.wait (%p1951_p2), %s1604_s0, 128  }
 0x501   : > { %2107 = vsyncadd (%p1951_p2), %s1604_s0, 4294967168  ;;  %s23_s18 = sadd.s32 1, %s2130_s18   ;;  %s2540_s13 = smov %s2114_s14 }
 0x502   : > { %p20_p3 = scmp.ge.s32.totalorder %s23_s18, 4   ;;  %s2541_s14 = smov %s2118_s15 }
 0x503   : > { %s2542_s15 = smov %s2249_s26  ;;  %s2543_s16 = smov %s2126_s17 }
 0x504   : > { %s2544_s17 = smov %s2546_s21  ;;  %22 = sbr.rel (!%p20_p3) target bundleno = 6 (0x6), region = 126 }
 0x509   :  { %1609 = vsyncpa [#allocation6], 1 }
 0x50a   :  { %1611 = vsyncpa [#allocation6 + $0x1], 1 }

</bundles_post_ra>
